<compile_context>
chip_gen: v6e
topology: v6e:2x2x1
jax: 0.10.0
libtpu: 0.0.40
codegen_flags: <defaults>
</compile_context>

<pallas_src>
import math

import jax
import jax.numpy as jnp
from jax.experimental import pallas as pl
from jax.experimental.pallas import tpu as pltpu

_LANE = 128


# --------------------------------------------------------------------------- #
# Kernel
# --------------------------------------------------------------------------- #
def control_block_kernel(
    x_ref, e_ref,
    w1x_ref, w1e_ref,                 # zero_layer1 (split for the lane concat)
    wf0_ref, wf1_ref, wl_ref,         # trainable_block
    w2y_ref, w2e_ref,                 # zero_layer2 (split for the lane concat)
    bias_ref,                         # packed (8, max_dim) bias slab (f32)
    out_ref,
    stack_ref,                        # (2*TB, Dp) VMEM scratch, mm dtype
):
    mm_dtype = wf0_ref.dtype
    tb = x_ref.shape[0]
    dp = w1x_ref.shape[1]
    h0p = wf0_ref.shape[1]
    h1p = wf1_ref.shape[1]
    op = wl_ref.shape[1]

    x = x_ref[...]                                    # (TB, Dp)  f32
    x_mm = x.astype(mm_dtype)                         # cast once
    e_mm = e_ref[...].astype(mm_dtype)                # cast once, reused twice

    # Unpack bias rows (all slices lane-aligned: widths are multiples of 128).
    b1 = bias_ref[0:1, :dp]
    bf0 = bias_ref[1:2, :h0p]
    bf1 = bias_ref[2:3, :h1p]
    bl = bias_ref[3:4, :op]
    b2 = bias_ref[4:5, :op]

    def mm(a, w_ref):
        return jnp.dot(a, w_ref[...], preferred_element_type=jnp.float32)

    # zero_layer1(cat([x, extra], 1)) as split-weight matmuls (no lane concat).
    delta_x = mm(x_mm, w1x_ref) + mm(e_mm, w1e_ref) + b1
    x_mod = x + delta_x

    # trainable_block evaluated ONCE on [x_mod; x] stacked along the batch
    # (sublane) axis.  The stack lives in a VMEM scratch written via two
    # tile-aligned ref stores (no traced-value concatenate copy).
    stack_ref[0:tb, :] = x_mod.astype(mm_dtype)
    stack_ref[tb:2 * tb, :] = x_mm

    h = jnp.tanh(mm(stack_ref[...], wf0_ref) + bf0)
    h = jnp.tanh(mm(h.astype(mm_dtype), wf1_ref) + bf1)
    y2 = mm(h.astype(mm_dtype), wl_ref) + bl          # (2*TB, Op) f32

    y_mod = y2[0:tb]                                  # trainable_block(x + delta_x)
    y_x = y2[tb:2 * tb]                               # trainable_block(x)

    # zero_layer2(cat([y_, extra], 1))
    delta_y = mm(y_mod.astype(mm_dtype), w2y_ref) + mm(e_mm, w2e_ref) + b2

    out_ref[...] = y_x + delta_y


# --------------------------------------------------------------------------- #
# Wrapper
# --------------------------------------------------------------------------- #
def _round_up(n, m):
    return ((n + m - 1) // m) * m


def _maybe_pad2(a, rows, cols):
    if a.shape == (rows, cols):
        return a
    return jnp.pad(a, ((0, rows - a.shape[0]), (0, cols - a.shape[1])))


def _default_batch_tile(batch):
    bp8 = _round_up(batch, 8)
    if bp8 < 16:
        return bp8
    # >= 2 grid steps so the "parallel" batch axis can shard across both
    # TensorCores on v7x; cap at 512 to amortize per-step overhead on the
    # single-TC v5e/v6e without blowing VMEM.
    return min(_round_up(pl.cdiv(bp8, 2), 8), 512)


def prepare_params(params, *, mm_dtype=jnp.float32):
    """One-time lane-dense padding + dtype cast of all weights (hoisted out of
    the per-call forward).  mm_dtype=jnp.bfloat16 is the recommended default
    on v6e/v7x (f32 accumulation is kept inside the kernel); jnp.float32 keeps
    bit-exact parity with the reference.

    NOTE: the matmul correctness relies on the explicit ZERO padding of the
    contraction lanes done here — keep that invariant."""
    D = params["wf0"].shape[0]
    E = params["w1e"].shape[0]
    H0 = params["wf0"].shape[1]
    H1 = params["wf1"].shape[1]
    O = params["wl"].shape[1]
    Dp, Ep, H0p, H1p, Op = (_round_up(d, _LANE) for d in (D, E, H0, H1, O))

    def pad_w(a, r, c):
        return _maybe_pad2(a.astype(jnp.float32), r, c).astype(mm_dtype)

    w1x = pad_w(params["w1x"], Dp, Dp)
    w1e = pad_w(params["w1e"], Ep, Dp)
    wf0 = pad_w(params["wf0"], Dp, H0p)
    wf1 = pad_w(params["wf1"], H0p, H1p)
    wl = pad_w(params["wl"], H1p, Op)
    w2y = pad_w(params["w2y"], Op, Op)
    w2e = pad_w(params["w2e"], Ep, Op)

    # Pack the five (1, dim) biases into a single (8, max_dim) f32 slab:
    # one VMEM tile / one DMA instead of five.
    mx = max(Dp, H0p, H1p, Op)
    bias = jnp.zeros((8, mx), jnp.float32)
    for i, b in enumerate((params["b1"], params["bf0"], params["bf1"],
                           params["bl"], params["b2"])):
        bias = bias.at[i, : b.shape[-1]].set(b.reshape(-1).astype(jnp.float32))

    weights = (w1x, w1e, wf0, wf1, wl, w2y, w2e, bias)
    weights = tuple(jax.block_until_ready(w) for w in weights)  # pay prep once
    dims = dict(D=D, E=E, H0=H0, H1=H1, O=O,
                Dp=Dp, Ep=Ep, H0p=H0p, H1p=H1p, Op=Op)
    return dict(weights=weights, dims=dims, mm_dtype=jnp.dtype(mm_dtype))


def control_block_forward(x, extra, prepared, *, batch_tile=None,
                          return_padded=False):
    dims = prepared["dims"]
    weights = prepared["weights"]
    mm_dtype = prepared["mm_dtype"]

    D, E, O = dims["D"], dims["E"], dims["O"]
    Dp, Ep, Op = dims["Dp"], dims["Ep"], dims["Op"]
    H0p, H1p = dims["H0p"], dims["H1p"]

    B = x.shape[0]
    assert x.shape[1] == D and extra.shape == (B, E)

    if batch_tile is None:
        batch_tile = _default_batch_tile(B)
    TB = _round_up(batch_tile, 8)
    Bp = _round_up(B, TB)

    # Guarded pads of the activations (skipped entirely when already aligned).
    xp = _maybe_pad2(x.astype(jnp.float32), Bp, Dp)
    ep = _maybe_pad2(extra.astype(jnp.float32), Bp, Ep)

    batch_map = lambda i: (i, 0)
    const_map = lambda i: (0, 0)        # weights DMA'd once, stay VMEM-resident

    # VMEM budget: single-buffered weights + double-buffered x/e/out tiles
    # + stacked activation slabs, with headroom.
    weight_bytes = sum(int(w.size) * w.dtype.itemsize for w in weights)
    tile_bytes = 4 * TB * (Dp + Ep + Op)
    stack_bytes = 2 * TB * Dp * jnp.dtype(mm_dtype).itemsize
    act_bytes = 4 * 2 * TB * max(Dp, H0p, H1p, Op)
    vmem_limit = int(weight_bytes + 2 * tile_bytes + stack_bytes
                     + 6 * act_bytes) + (4 << 20)
    vmem_limit = min(max(vmem_limit, 16 << 20), 64 << 20)

    # Advisory cost estimate (true, unpadded flops).
    H0, H1 = dims["H0"], dims["H1"]
    flops = 2 * B * (D * D + E * D + 2 * (D * H0 + H0 * H1 + H1 * O)
                     + O * O + E * O)
    transcendentals = 2 * B * (H0 + H1)
    bytes_accessed = 4 * (Bp * Dp + Bp * Ep + Bp * Op) + weight_bytes

    def _weight_specs(pipeline_mode):
        if pipeline_mode is None:
            return [pl.BlockSpec(w.shape, const_map) for w in weights]
        return [pl.BlockSpec(w.shape, const_map, pipeline_mode=pipeline_mode)
                for w in weights]

    def _call(pipeline_mode):
        return pl.pallas_call(
            control_block_kernel,
            out_shape=jax.ShapeDtypeStruct((Bp, Op), jnp.float32),
            grid=(Bp // TB,),
            in_specs=[pl.BlockSpec((TB, Dp), batch_map),
                      pl.BlockSpec((TB, Ep), batch_map)]
                     + _weight_specs(pipeline_mode),
            out_specs=pl.BlockSpec((TB, Op), batch_map),
            scratch_shapes=[pltpu.VMEM((2 * TB, Dp), mm_dtype)],
            compiler_params=pltpu.CompilerParams(
                dimension_semantics=("parallel",),
                vmem_limit_bytes=vmem_limit),
            cost_estimate=pl.CostEstimate(
                flops=flops,
                transcendentals=transcendentals,
                bytes_accessed=bytes_accessed),
        )(xp, ep, *weights)

    try:
        # Single-buffer the constant weight blocks (their block index never
        # changes) -> halves resident weight VMEM.
        out = _call(pl.Buffered(1))
    except Exception:
        # Fallback for JAX versions that reject Buffered(1)/pipeline_mode:
        # default double-buffered constant blocks (correct, slightly more VMEM).
        out = _call(None)

    if return_padded or (Bp == B and Op == O):
        return out
    return out[:B, :O]


# --------------------------------------------------------------------------- #
# Parameter construction + pure-JAX reference
# --------------------------------------------------------------------------- #
def _linear_init(key, fan_in, fan_out):
    """Deterministic PyTorch-nn.Linear-style uniform init, weight as (in, out)."""
    kw, kb = jax.random.split(key)
    bound = 1.0 / math.sqrt(fan_in)
    w = jax.random.uniform(kw, (fan_in, fan_out), jnp.float32, -bound, bound)
    b = jax.random.uniform(kb, (1, fan_out), jnp.float32, -bound, bound)
    return w, b


def make_params(key, input_dim, output_dim, extra_input_dim, hidden_size):
    k = jax.random.split(key, 3)
    wf0, bf0 = _linear_init(k[0], input_dim, hidden_size[0])
    wf1, bf1 = _linear_init(k[1], hidden_size[0], hidden_size[1])
    wl, bl = _linear_init(k[2], hidden_size[1], output_dim)
    # zero layers: constant_init(val=0, bias=0) per ControlBlock.init()
    # (kept as general weights — they train to nonzero, no special-casing).
    return dict(
        w1x=jnp.zeros((input_dim, input_dim), jnp.float32),
        w1e=jnp.zeros((extra_input_dim, input_dim), jnp.float32),
        b1=jnp.zeros((1, input_dim), jnp.float32),
        wf0=wf0, bf0=bf0, wf1=wf1, bf1=bf1, wl=wl, bl=bl,
        w2y=jnp.zeros((output_dim, output_dim), jnp.float32),
        w2e=jnp.zeros((extra_input_dim, output_dim), jnp.float32),
        b2=jnp.zeros((1, output_dim), jnp.float32),
    )


def control_block_ref(x, extra, p):
    """Pure-JAX reference for correctness checking."""
    def block_fwd(inp):
        h = jnp.tanh(inp @ p["wf0"] + p["bf0"])
        h = jnp.tanh(h @ p["wf1"] + p["bf1"])
        return h @ p["wl"] + p["bl"]

    delta_x = x @ p["w1x"] + extra @ p["w1e"] + p["b1"]
    y_ = block_fwd(x + delta_x)
    delta_y = y_ @ p["w2y"] + extra @ p["w2e"] + p["b2"]
    return block_fwd(x) + delta_y


# --------------------------------------------------------------------------- #
# Test
# --------------------------------------------------------------------------- #
if __name__ == "__main__":
    batch = 8
    input_dim = 16
    output_dim = 8
    extra_input_dim = 8
    hidden_size = [64, 64]

    key = jax.random.PRNGKey(0)
    kx, ke, kp = jax.random.split(key, 3)
    x = jax.random.normal(kx, (batch, input_dim), jnp.float32)
    extra = jax.random.normal(ke, (batch, extra_input_dim), jnp.float32)
    params = make_params(kp, input_dim, output_dim, extra_input_dim, hidden_size)
    ref = control_block_ref(x, extra, params)

    # f32 MXU path — exact vs. reference.
    prep_f32 = prepare_params(params, mm_dtype=jnp.float32)
    out = jax.block_until_ready(control_block_forward(x, extra, prep_f32))
    assert out.shape == (batch, output_dim)
    assert jnp.allclose(out, ref, atol=1e-5, rtol=1e-5), "f32 mismatch vs reference"

    # bf16-weight MXU path (recommended default on v6e/v7x); f32 accumulation,
    # loosened tolerance because weights are rounded to bf16.
    prep_bf16 = prepare_params(params, mm_dtype=jnp.bfloat16)
    out_bf16 = jax.block_until_ready(control_block_forward(x, extra, prep_bf16))
    assert out_bf16.shape == (batch, output_dim)
    assert jnp.allclose(out_bf16, ref, atol=3e-2, rtol=3e-2), "bf16 mismatch vs reference"

    # Multi-tile / padded-batch path (grid >= 2; exercises the v7x megacore split).
    batch2 = 40
    x2 = jax.random.normal(jax.random.PRNGKey(1), (batch2, input_dim), jnp.float32)
    e2 = jax.random.normal(jax.random.PRNGKey(2), (batch2, extra_input_dim), jnp.float32)
    out2 = jax.block_until_ready(control_block_forward(x2, e2, prep_f32))
    ref2 = control_block_ref(x2, e2, params)
    assert out2.shape == (batch2, output_dim)
    assert jnp.allclose(out2, ref2, atol=1e-5, rtol=1e-5), "multi-tile mismatch"

    print("KERNEL_OK")
</pallas_src>

<mosaic_0001>
module attributes {stable_mosaic.version = 11 : i64} {
  func.func @control_block_kernel(%arg0: i32, %arg1: memref<8x128xf32, #tpu.memory_space<vmem>>, %arg2: memref<8x128xf32, #tpu.memory_space<vmem>>, %arg3: memref<128x128xf32, #tpu.memory_space<vmem>>, %arg4: memref<128x128xf32, #tpu.memory_space<vmem>>, %arg5: memref<128x128xf32, #tpu.memory_space<vmem>>, %arg6: memref<128x128xf32, #tpu.memory_space<vmem>>, %arg7: memref<128x128xf32, #tpu.memory_space<vmem>>, %arg8: memref<128x128xf32, #tpu.memory_space<vmem>>, %arg9: memref<128x128xf32, #tpu.memory_space<vmem>>, %arg10: memref<8x128xf32, #tpu.memory_space<vmem>>, %arg11: memref<8x128xf32, #tpu.memory_space<vmem>>, %arg12: memref<16x128xf32, #tpu.memory_space<vmem>>) attributes {dimension_semantics = [#tpu.dimension_semantics<parallel>], iteration_bounds = array<i64: 1>, scalar_prefetch = 0 : i64, scratch_operands = 1 : i64, tpu.core_type = #tpu.core_type<tc>, window_params = [{transform_indices = @transform_0, window_bounds = array<i64: 8, 128>}, {transform_indices = @transform_1, window_bounds = array<i64: 8, 128>}, {pipeline_mode = #tpu.pipeline_mode<synchronous>, transform_indices = @transform_2, window_bounds = array<i64: 128, 128>}, {pipeline_mode = #tpu.pipeline_mode<synchronous>, transform_indices = @transform_3, window_bounds = array<i64: 128, 128>}, {pipeline_mode = #tpu.pipeline_mode<synchronous>, transform_indices = @transform_4, window_bounds = array<i64: 128, 128>}, {pipeline_mode = #tpu.pipeline_mode<synchronous>, transform_indices = @transform_5, window_bounds = array<i64: 128, 128>}, {pipeline_mode = #tpu.pipeline_mode<synchronous>, transform_indices = @transform_6, window_bounds = array<i64: 128, 128>}, {pipeline_mode = #tpu.pipeline_mode<synchronous>, transform_indices = @transform_7, window_bounds = array<i64: 128, 128>}, {pipeline_mode = #tpu.pipeline_mode<synchronous>, transform_indices = @transform_8, window_bounds = array<i64: 128, 128>}, {pipeline_mode = #tpu.pipeline_mode<synchronous>, transform_indices = @transform_9, window_bounds = array<i64: 8, 128>}, {transform_indices = @transform_10, window_bounds = array<i64: 8, 128>}]} {
    %c0 = arith.constant 0 : index
    %c0_0 = arith.constant 0 : index
    %0 = vector.load %arg1[%c0, %c0_0] : memref<8x128xf32, #tpu.memory_space<vmem>>, vector<8x128xf32>
    %c0_1 = arith.constant 0 : index
    %c0_2 = arith.constant 0 : index
    %1 = vector.load %arg2[%c0_1, %c0_2] : memref<8x128xf32, #tpu.memory_space<vmem>>, vector<8x128xf32>
    %c0_3 = arith.constant 0 : index
    %c0_4 = arith.constant 0 : index
    %2 = vector.load %arg10[%c0_3, %c0_4] : memref<8x128xf32, #tpu.memory_space<vmem>>, vector<1x128xf32>
    %c1 = arith.constant 1 : index
    %c0_5 = arith.constant 0 : index
    %3 = vector.load %arg10[%c1, %c0_5] : memref<8x128xf32, #tpu.memory_space<vmem>>, vector<1x128xf32>
    %c2 = arith.constant 2 : index
    %c0_6 = arith.constant 0 : index
    %4 = vector.load %arg10[%c2, %c0_6] : memref<8x128xf32, #tpu.memory_space<vmem>>, vector<1x128xf32>
    %c3 = arith.constant 3 : index
    %c0_7 = arith.constant 0 : index
    %5 = vector.load %arg10[%c3, %c0_7] : memref<8x128xf32, #tpu.memory_space<vmem>>, vector<1x128xf32>
    %c4 = arith.constant 4 : index
    %c0_8 = arith.constant 0 : index
    %6 = vector.load %arg10[%c4, %c0_8] : memref<8x128xf32, #tpu.memory_space<vmem>>, vector<1x128xf32>
    %c0_9 = arith.constant 0 : index
    %c0_10 = arith.constant 0 : index
    %7 = vector.load %arg3[%c0_9, %c0_10] : memref<128x128xf32, #tpu.memory_space<vmem>>, vector<128x128xf32>
    %cst = arith.constant dense<0.000000e+00> : vector<8x128xf32>
    %8 = tpu.matmul %0, %7, %cst {dimension_numbers = #tpu.dot_dimension_numbers<[1], [0], [0], [1], [0, 0, 1, 1], [], []>} : vector<8x128xf32>, vector<128x128xf32>, vector<8x128xf32> -> vector<8x128xf32>
    %c0_11 = arith.constant 0 : index
    %c0_12 = arith.constant 0 : index
    %9 = vector.load %arg4[%c0_11, %c0_12] : memref<128x128xf32, #tpu.memory_space<vmem>>, vector<128x128xf32>
    %cst_13 = arith.constant dense<0.000000e+00> : vector<8x128xf32>
    %10 = tpu.matmul %1, %9, %cst_13 {dimension_numbers = #tpu.dot_dimension_numbers<[1], [0], [0], [1], [0, 0, 1, 1], [], []>} : vector<8x128xf32>, vector<128x128xf32>, vector<8x128xf32> -> vector<8x128xf32>
    %11 = arith.addf %8, %10 : vector<8x128xf32>
    %12 = vector.broadcast %2 : vector<1x128xf32> to vector<8x128xf32>
    %13 = arith.addf %11, %12 : vector<8x128xf32>
    %14 = arith.addf %0, %13 : vector<8x128xf32>
    %c0_14 = arith.constant 0 : index
    %c0_15 = arith.constant 0 : index
    %15 = vector.load %arg12[%c0_14, %c0_15] : memref<16x128xf32, #tpu.memory_space<vmem>>, vector<8x128xf32>
    tpu.vector_store %arg12[%c0_14, %c0_15], %14 {strides = array<i32>} : memref<16x128xf32, #tpu.memory_space<vmem>>, vector<8x128xf32>,
    %c8 = arith.constant 8 : index
    %c0_16 = arith.constant 0 : index
    %16 = vector.load %arg12[%c8, %c0_16] : memref<16x128xf32, #tpu.memory_space<vmem>>, vector<8x128xf32>
    tpu.vector_store %arg12[%c8, %c0_16], %0 {strides = array<i32>} : memref<16x128xf32, #tpu.memory_space<vmem>>, vector<8x128xf32>,
    %c0_17 = arith.constant 0 : index
    %c0_18 = arith.constant 0 : index
    %17 = vector.load %arg12[%c0_17, %c0_18] : memref<16x128xf32, #tpu.memory_space<vmem>>, vector<16x128xf32>
    %c0_19 = arith.constant 0 : index
    %c0_20 = arith.constant 0 : index
    %18 = vector.load %arg5[%c0_19, %c0_20] : memref<128x128xf32, #tpu.memory_space<vmem>>, vector<128x128xf32>
    %cst_21 = arith.constant dense<0.000000e+00> : vector<16x128xf32>
    %19 = tpu.matmul %17, %18, %cst_21 {dimension_numbers = #tpu.dot_dimension_numbers<[1], [0], [0], [1], [0, 0, 1, 1], [], []>} : vector<16x128xf32>, vector<128x128xf32>, vector<16x128xf32> -> vector<16x128xf32>
    %20 = vector.broadcast %3 : vector<1x128xf32> to vector<16x128xf32>
    %21 = arith.addf %19, %20 : vector<16x128xf32>
    %22 = math.tanh %21 : vector<16x128xf32>
    %c0_22 = arith.constant 0 : index
    %c0_23 = arith.constant 0 : index
    %23 = vector.load %arg6[%c0_22, %c0_23] : memref<128x128xf32, #tpu.memory_space<vmem>>, vector<128x128xf32>
    %cst_24 = arith.constant dense<0.000000e+00> : vector<16x128xf32>
    %24 = tpu.matmul %22, %23, %cst_24 {dimension_numbers = #tpu.dot_dimension_numbers<[1], [0], [0], [1], [0, 0, 1, 1], [], []>} : vector<16x128xf32>, vector<128x128xf32>, vector<16x128xf32> -> vector<16x128xf32>
    %25 = vector.broadcast %4 : vector<1x128xf32> to vector<16x128xf32>
    %26 = arith.addf %24, %25 : vector<16x128xf32>
    %27 = math.tanh %26 : vector<16x128xf32>
    %c0_25 = arith.constant 0 : index
    %c0_26 = arith.constant 0 : index
    %28 = vector.load %arg7[%c0_25, %c0_26] : memref<128x128xf32, #tpu.memory_space<vmem>>, vector<128x128xf32>
    %cst_27 = arith.constant dense<0.000000e+00> : vector<16x128xf32>
    %29 = tpu.matmul %27, %28, %cst_27 {dimension_numbers = #tpu.dot_dimension_numbers<[1], [0], [0], [1], [0, 0, 1, 1], [], []>} : vector<16x128xf32>, vector<128x128xf32>, vector<16x128xf32> -> vector<16x128xf32>
    %30 = vector.broadcast %5 : vector<1x128xf32> to vector<16x128xf32>
    %31 = arith.addf %29, %30 : vector<16x128xf32>
    %32 = vector.extract_strided_slice %31 {offsets = [0, 0], sizes = [8, 128], strides = [1, 1]} : vector<16x128xf32> to vector<8x128xf32>
    %33 = vector.extract_strided_slice %31 {offsets = [8, 0], sizes = [8, 128], strides = [1, 1]} : vector<16x128xf32> to vector<8x128xf32>
    %c0_28 = arith.constant 0 : index
    %c0_29 = arith.constant 0 : index
    %34 = vector.load %arg8[%c0_28, %c0_29] : memref<128x128xf32, #tpu.memory_space<vmem>>, vector<128x128xf32>
    %cst_30 = arith.constant dense<0.000000e+00> : vector<8x128xf32>
    %35 = tpu.matmul %32, %34, %cst_30 {dimension_numbers = #tpu.dot_dimension_numbers<[1], [0], [0], [1], [0, 0, 1, 1], [], []>} : vector<8x128xf32>, vector<128x128xf32>, vector<8x128xf32> -> vector<8x128xf32>
    %c0_31 = arith.constant 0 : index
    %c0_32 = arith.constant 0 : index
    %36 = vector.load %arg9[%c0_31, %c0_32] : memref<128x128xf32, #tpu.memory_space<vmem>>, vector<128x128xf32>
    %cst_33 = arith.constant dense<0.000000e+00> : vector<8x128xf32>
    %37 = tpu.matmul %1, %36, %cst_33 {dimension_numbers = #tpu.dot_dimension_numbers<[1], [0], [0], [1], [0, 0, 1, 1], [], []>} : vector<8x128xf32>, vector<128x128xf32>, vector<8x128xf32> -> vector<8x128xf32>
    %38 = arith.addf %35, %37 : vector<8x128xf32>
    %39 = vector.broadcast %6 : vector<1x128xf32> to vector<8x128xf32>
    %40 = arith.addf %38, %39 : vector<8x128xf32>
    %41 = arith.addf %33, %40 : vector<8x128xf32>
    %c0_34 = arith.constant 0 : index
    %c0_35 = arith.constant 0 : index
    %42 = vector.load %arg11[%c0_34, %c0_35] : memref<8x128xf32, #tpu.memory_space<vmem>>, vector<8x128xf32>
    tpu.vector_store %arg11[%c0_34, %c0_35], %41 {strides = array<i32>} : memref<8x128xf32, #tpu.memory_space<vmem>>, vector<8x128xf32>,
    return
  }
  func.func @transform_0(%arg0: i32) -> (i32, i32) {
    %c0_i32 = arith.constant 0 : i32
    %c0_i32_0 = arith.constant 0 : i32
    return %arg0, %c0_i32 : i32, i32
  }
  func.func @transform_1(%arg0: i32) -> (i32, i32) {
    %c0_i32 = arith.constant 0 : i32
    %c0_i32_0 = arith.constant 0 : i32
    return %arg0, %c0_i32 : i32, i32
  }
  func.func @transform_2(%arg0: i32) -> (i32, i32) {
    %c0_i32 = arith.constant 0 : i32
    %c0_i32_0 = arith.constant 0 : i32
    %c0_i32_1 = arith.constant 0 : i32
    return %c0_i32, %c0_i32_0 : i32, i32
  }
  func.func @transform_3(%arg0: i32) -> (i32, i32) {
    %c0_i32 = arith.constant 0 : i32
    %c0_i32_0 = arith.constant 0 : i32
    %c0_i32_1 = arith.constant 0 : i32
    return %c0_i32, %c0_i32_0 : i32, i32
  }
  func.func @transform_4(%arg0: i32) -> (i32, i32) {
    %c0_i32 = arith.constant 0 : i32
    %c0_i32_0 = arith.constant 0 : i32
    %c0_i32_1 = arith.constant 0 : i32
    return %c0_i32, %c0_i32_0 : i32, i32
  }
  func.func @transform_5(%arg0: i32) -> (i32, i32) {
    %c0_i32 = arith.constant 0 : i32
    %c0_i32_0 = arith.constant 0 : i32
    %c0_i32_1 = arith.constant 0 : i32
    return %c0_i32, %c0_i32_0 : i32, i32
  }
  func.func @transform_6(%arg0: i32) -> (i32, i32) {
    %c0_i32 = arith.constant 0 : i32
    %c0_i32_0 = arith.constant 0 : i32
    %c0_i32_1 = arith.constant 0 : i32
    return %c0_i32, %c0_i32_0 : i32, i32
  }
  func.func @transform_7(%arg0: i32) -> (i32, i32) {
    %c0_i32 = arith.constant 0 : i32
    %c0_i32_0 = arith.constant 0 : i32
    %c0_i32_1 = arith.constant 0 : i32
    return %c0_i32, %c0_i32_0 : i32, i32
  }
  func.func @transform_8(%arg0: i32) -> (i32, i32) {
    %c0_i32 = arith.constant 0 : i32
    %c0_i32_0 = arith.constant 0 : i32
    %c0_i32_1 = arith.constant 0 : i32
    return %c0_i32, %c0_i32_0 : i32, i32
  }
  func.func @transform_9(%arg0: i32) -> (i32, i32) {
    %c0_i32 = arith.constant 0 : i32
    %c0_i32_0 = arith.constant 0 : i32
    %c0_i32_1 = arith.constant 0 : i32
    return %c0_i32, %c0_i32_0 : i32, i32
  }
  func.func @transform_10(%arg0: i32) -> (i32, i32) {
    %c0_i32 = arith.constant 0 : i32
    %c0_i32_0 = arith.constant 0 : i32
    return %arg0, %c0_i32 : i32, i32
  }
}

module attributes {stable_mosaic.version = 11 : i64} {
  func.func @control_block_kernel(%arg0: i32, %arg1: memref<8x128xf32, #tpu.memory_space<vmem>>, %arg2: memref<8x128xf32, #tpu.memory_space<vmem>>, %arg3: memref<128x128xf32, #tpu.memory_space<vmem>>, %arg4: memref<128x128xf32, #tpu.memory_space<vmem>>, %arg5: memref<128x128xf32, #tpu.memory_space<vmem>>, %arg6: memref<128x128xf32, #tpu.memory_space<vmem>>, %arg7: memref<128x128xf32, #tpu.memory_space<vmem>>, %arg8: memref<128x128xf32, #tpu.memory_space<vmem>>, %arg9: memref<128x128xf32, #tpu.memory_space<vmem>>, %arg10: memref<8x128xf32, #tpu.memory_space<vmem>>, %arg11: memref<8x128xf32, #tpu.memory_space<vmem>>, %arg12: memref<16x128xf32, #tpu.memory_space<vmem>>) attributes {dimension_semantics = [#tpu.dimension_semantics<parallel>], iteration_bounds = array<i64: 1>, scalar_prefetch = 0 : i64, scratch_operands = 1 : i64, tpu.core_type = #tpu.core_type<tc>, window_params = [{transform_indices = @transform_0, window_bounds = array<i64: 8, 128>}, {transform_indices = @transform_1, window_bounds = array<i64: 8, 128>}, {pipeline_mode = #tpu.pipeline_mode<synchronous>, transform_indices = @transform_2, window_bounds = array<i64: 128, 128>}, {pipeline_mode = #tpu.pipeline_mode<synchronous>, transform_indices = @transform_3, window_bounds = array<i64: 128, 128>}, {pipeline_mode = #tpu.pipeline_mode<synchronous>, transform_indices = @transform_4, window_bounds = array<i64: 128, 128>}, {pipeline_mode = #tpu.pipeline_mode<synchronous>, transform_indices = @transform_5, window_bounds = array<i64: 128, 128>}, {pipeline_mode = #tpu.pipeline_mode<synchronous>, transform_indices = @transform_6, window_bounds = array<i64: 128, 128>}, {pipeline_mode = #tpu.pipeline_mode<synchronous>, transform_indices = @transform_7, window_bounds = array<i64: 128, 128>}, {pipeline_mode = #tpu.pipeline_mode<synchronous>, transform_indices = @transform_8, window_bounds = array<i64: 128, 128>}, {pipeline_mode = #tpu.pipeline_mode<synchronous>, transform_indices = @transform_9, window_bounds = array<i64: 8, 128>}, {transform_indices = @transform_10, window_bounds = array<i64: 8, 128>}]} {
    %c0 = arith.constant 0 : index
    %c0_0 = arith.constant 0 : index
    %0 = vector.load %arg1[%c0, %c0_0] : memref<8x128xf32, #tpu.memory_space<vmem>>, vector<8x128xf32>
    %c0_1 = arith.constant 0 : index
    %c0_2 = arith.constant 0 : index
    %1 = vector.load %arg2[%c0_1, %c0_2] : memref<8x128xf32, #tpu.memory_space<vmem>>, vector<8x128xf32>
    %c0_3 = arith.constant 0 : index
    %c0_4 = arith.constant 0 : index
    %2 = vector.load %arg10[%c0_3, %c0_4] : memref<8x128xf32, #tpu.memory_space<vmem>>, vector<1x128xf32>
    %c1 = arith.constant 1 : index
    %c0_5 = arith.constant 0 : index
    %3 = vector.load %arg10[%c1, %c0_5] : memref<8x128xf32, #tpu.memory_space<vmem>>, vector<1x128xf32>
    %c2 = arith.constant 2 : index
    %c0_6 = arith.constant 0 : index
    %4 = vector.load %arg10[%c2, %c0_6] : memref<8x128xf32, #tpu.memory_space<vmem>>, vector<1x128xf32>
    %c3 = arith.constant 3 : index
    %c0_7 = arith.constant 0 : index
    %5 = vector.load %arg10[%c3, %c0_7] : memref<8x128xf32, #tpu.memory_space<vmem>>, vector<1x128xf32>
    %c4 = arith.constant 4 : index
    %c0_8 = arith.constant 0 : index
    %6 = vector.load %arg10[%c4, %c0_8] : memref<8x128xf32, #tpu.memory_space<vmem>>, vector<1x128xf32>
    %c0_9 = arith.constant 0 : index
    %c0_10 = arith.constant 0 : index
    %7 = vector.load %arg3[%c0_9, %c0_10] : memref<128x128xf32, #tpu.memory_space<vmem>>, vector<128x128xf32>
    %cst = arith.constant dense<0.000000e+00> : vector<8x128xf32>
    %8 = tpu.matmul %0, %7, %cst {dimension_numbers = #tpu.dot_dimension_numbers<[1], [0], [0], [1], [0, 0, 1, 1], [], []>} : vector<8x128xf32>, vector<128x128xf32>, vector<8x128xf32> -> vector<8x128xf32>
    %c0_11 = arith.constant 0 : index
    %c0_12 = arith.constant 0 : index
    %9 = vector.load %arg4[%c0_11, %c0_12] : memref<128x128xf32, #tpu.memory_space<vmem>>, vector<128x128xf32>
    %cst_13 = arith.constant dense<0.000000e+00> : vector<8x128xf32>
    %10 = tpu.matmul %1, %9, %cst_13 {dimension_numbers = #tpu.dot_dimension_numbers<[1], [0], [0], [1], [0, 0, 1, 1], [], []>} : vector<8x128xf32>, vector<128x128xf32>, vector<8x128xf32> -> vector<8x128xf32>
    %11 = arith.addf %8, %10 : vector<8x128xf32>
    %12 = vector.broadcast %2 : vector<1x128xf32> to vector<8x128xf32>
    %13 = arith.addf %11, %12 : vector<8x128xf32>
    %14 = arith.addf %0, %13 : vector<8x128xf32>
    %c0_14 = arith.constant 0 : index
    %c0_15 = arith.constant 0 : index
    %15 = vector.load %arg12[%c0_14, %c0_15] : memref<16x128xf32, #tpu.memory_space<vmem>>, vector<8x128xf32>
    tpu.vector_store %arg12[%c0_14, %c0_15], %14 {strides = array<i32>} : memref<16x128xf32, #tpu.memory_space<vmem>>, vector<8x128xf32>,
    %c8 = arith.constant 8 : index
    %c0_16 = arith.constant 0 : index
    %16 = vector.load %arg12[%c8, %c0_16] : memref<16x128xf32, #tpu.memory_space<vmem>>, vector<8x128xf32>
    tpu.vector_store %arg12[%c8, %c0_16], %0 {strides = array<i32>} : memref<16x128xf32, #tpu.memory_space<vmem>>, vector<8x128xf32>,
    %c0_17 = arith.constant 0 : index
    %c0_18 = arith.constant 0 : index
    %17 = vector.load %arg12[%c0_17, %c0_18] : memref<16x128xf32, #tpu.memory_space<vmem>>, vector<16x128xf32>
    %c0_19 = arith.constant 0 : index
    %c0_20 = arith.constant 0 : index
    %18 = vector.load %arg5[%c0_19, %c0_20] : memref<128x128xf32, #tpu.memory_space<vmem>>, vector<128x128xf32>
    %cst_21 = arith.constant dense<0.000000e+00> : vector<16x128xf32>
    %19 = tpu.matmul %17, %18, %cst_21 {dimension_numbers = #tpu.dot_dimension_numbers<[1], [0], [0], [1], [0, 0, 1, 1], [], []>} : vector<16x128xf32>, vector<128x128xf32>, vector<16x128xf32> -> vector<16x128xf32>
    %20 = vector.broadcast %3 : vector<1x128xf32> to vector<16x128xf32>
    %21 = arith.addf %19, %20 : vector<16x128xf32>
    %22 = math.tanh %21 : vector<16x128xf32>
    %c0_22 = arith.constant 0 : index
    %c0_23 = arith.constant 0 : index
    %23 = vector.load %arg6[%c0_22, %c0_23] : memref<128x128xf32, #tpu.memory_space<vmem>>, vector<128x128xf32>
    %cst_24 = arith.constant dense<0.000000e+00> : vector<16x128xf32>
    %24 = tpu.matmul %22, %23, %cst_24 {dimension_numbers = #tpu.dot_dimension_numbers<[1], [0], [0], [1], [0, 0, 1, 1], [], []>} : vector<16x128xf32>, vector<128x128xf32>, vector<16x128xf32> -> vector<16x128xf32>
    %25 = vector.broadcast %4 : vector<1x128xf32> to vector<16x128xf32>
    %26 = arith.addf %24, %25 : vector<16x128xf32>
    %27 = math.tanh %26 : vector<16x128xf32>
    %c0_25 = arith.constant 0 : index
    %c0_26 = arith.constant 0 : index
    %28 = vector.load %arg7[%c0_25, %c0_26] : memref<128x128xf32, #tpu.memory_space<vmem>>, vector<128x128xf32>
    %cst_27 = arith.constant dense<0.000000e+00> : vector<16x128xf32>
    %29 = tpu.matmul %27, %28, %cst_27 {dimension_numbers = #tpu.dot_dimension_numbers<[1], [0], [0], [1], [0, 0, 1, 1], [], []>} : vector<16x128xf32>, vector<128x128xf32>, vector<16x128xf32> -> vector<16x128xf32>
    %30 = vector.broadcast %5 : vector<1x128xf32> to vector<16x128xf32>
    %31 = arith.addf %29, %30 : vector<16x128xf32>
    %32 = vector.extract_strided_slice %31 {offsets = [0, 0], sizes = [8, 128], strides = [1, 1]} : vector<16x128xf32> to vector<8x128xf32>
    %33 = vector.extract_strided_slice %31 {offsets = [8, 0], sizes = [8, 128], strides = [1, 1]} : vector<16x128xf32> to vector<8x128xf32>
    %c0_28 = arith.constant 0 : index
    %c0_29 = arith.constant 0 : index
    %34 = vector.load %arg8[%c0_28, %c0_29] : memref<128x128xf32, #tpu.memory_space<vmem>>, vector<128x128xf32>
    %cst_30 = arith.constant dense<0.000000e+00> : vector<8x128xf32>
    %35 = tpu.matmul %32, %34, %cst_30 {dimension_numbers = #tpu.dot_dimension_numbers<[1], [0], [0], [1], [0, 0, 1, 1], [], []>} : vector<8x128xf32>, vector<128x128xf32>, vector<8x128xf32> -> vector<8x128xf32>
    %c0_31 = arith.constant 0 : index
    %c0_32 = arith.constant 0 : index
    %36 = vector.load %arg9[%c0_31, %c0_32] : memref<128x128xf32, #tpu.memory_space<vmem>>, vector<128x128xf32>
    %cst_33 = arith.constant dense<0.000000e+00> : vector<8x128xf32>
    %37 = tpu.matmul %1, %36, %cst_33 {dimension_numbers = #tpu.dot_dimension_numbers<[1], [0], [0], [1], [0, 0, 1, 1], [], []>} : vector<8x128xf32>, vector<128x128xf32>, vector<8x128xf32> -> vector<8x128xf32>
    %38 = arith.addf %35, %37 : vector<8x128xf32>
    %39 = vector.broadcast %6 : vector<1x128xf32> to vector<8x128xf32>
    %40 = arith.addf %38, %39 : vector<8x128xf32>
    %41 = arith.addf %33, %40 : vector<8x128xf32>
    %c0_34 = arith.constant 0 : index
    %c0_35 = arith.constant 0 : index
    %42 = vector.load %arg11[%c0_34, %c0_35] : memref<8x128xf32, #tpu.memory_space<vmem>>, vector<8x128xf32>
    tpu.vector_store %arg11[%c0_34, %c0_35], %41 {strides = array<i32>} : memref<8x128xf32, #tpu.memory_space<vmem>>, vector<8x128xf32>,
    return
  }
  func.func @transform_0(%arg0: i32) -> (i32, i32) {
    %c0_i32 = arith.constant 0 : i32
    %c0_i32_0 = arith.constant 0 : i32
    return %arg0, %c0_i32 : i32, i32
  }
  func.func @transform_1(%arg0: i32) -> (i32, i32) {
    %c0_i32 = arith.constant 0 : i32
    %c0_i32_0 = arith.constant 0 : i32
    return %arg0, %c0_i32 : i32, i32
  }
  func.func @transform_2(%arg0: i32) -> (i32, i32) {
    %c0_i32 = arith.constant 0 : i32
    %c0_i32_0 = arith.constant 0 : i32
    %c0_i32_1 = arith.constant 0 : i32
    return %c0_i32, %c0_i32_0 : i32, i32
  }
  func.func @transform_3(%arg0: i32) -> (i32, i32) {
    %c0_i32 = arith.constant 0 : i32
    %c0_i32_0 = arith.constant 0 : i32
    %c0_i32_1 = arith.constant 0 : i32
    return %c0_i32, %c0_i32_0 : i32, i32
  }
  func.func @transform_4(%arg0: i32) -> (i32, i32) {
    %c0_i32 = arith.constant 0 : i32
    %c0_i32_0 = arith.constant 0 : i32
    %c0_i32_1 = arith.constant 0 : i32
    return %c0_i32, %c0_i32_0 : i32, i32
  }
  func.func @transform_5(%arg0: i32) -> (i32, i32) {
    %c0_i32 = arith.constant 0 : i32
    %c0_i32_0 = arith.constant 0 : i32
    %c0_i32_1 = arith.constant 0 : i32
    return %c0_i32, %c0_i32_0 : i32, i32
  }
  func.func @transform_6(%arg0: i32) -> (i32, i32) {
    %c0_i32 = arith.constant 0 : i32
    %c0_i32_0 = arith.constant 0 : i32
    %c0_i32_1 = arith.constant 0 : i32
    return %c0_i32, %c0_i32_0 : i32, i32
  }
  func.func @transform_7(%arg0: i32) -> (i32, i32) {
    %c0_i32 = arith.constant 0 : i32
    %c0_i32_0 = arith.constant 0 : i32
    %c0_i32_1 = arith.constant 0 : i32
    return %c0_i32, %c0_i32_0 : i32, i32
  }
  func.func @transform_8(%arg0: i32) -> (i32, i32) {
    %c0_i32 = arith.constant 0 : i32
    %c0_i32_0 = arith.constant 0 : i32
    %c0_i32_1 = arith.constant 0 : i32
    return %c0_i32, %c0_i32_0 : i32, i32
  }
  func.func @transform_9(%arg0: i32) -> (i32, i32) {
    %c0_i32 = arith.constant 0 : i32
    %c0_i32_0 = arith.constant 0 : i32
    %c0_i32_1 = arith.constant 0 : i32
    return %c0_i32, %c0_i32_0 : i32, i32
  }
  func.func @transform_10(%arg0: i32) -> (i32, i32) {
    %c0_i32 = arith.constant 0 : i32
    %c0_i32_0 = arith.constant 0 : i32
    return %arg0, %c0_i32 : i32, i32
  }
}

</mosaic_0001>

<bundles_post_ra>
// kernel: tpu_custom_call.1
= control target key start
LH: loop header
LB: loop body
LE: loop exit
PB: predicated region body
PF: predicated region fallthrough
CT: control target
= control target key end

     0   :  { %15 = vsyncpa [#allocation4], 0  ;;  %s1652_s0 = inlined_call_operand.hbm [shape: f32[8,128], index: 0, kind: input, shape index: {}]   ;;  %s1653_s1 = inlined_call_operand.hbm [shape: f32[8,128], index: 1, kind: input, shape index: {}]   ;;  %s1654_s2 = inlined_call_operand.hbm [shape: f32[128,128], index: 2, kind: input, shape index: {}]   ;;  %s1655_s3 = inlined_call_operand.hbm [shape: f32[128,128], index: 3, kind: input, shape index: {}]   ;;  %s1656_s4 = inlined_call_operand.hbm [shape: f32[128,128], index: 4, kind: input, shape index: {}]   ;;  %s1657_s5 = inlined_call_operand.hbm [shape: f32[128,128], index: 5, kind: input, shape index: {}]   ;;  %s1658_s6 = inlined_call_operand.hbm [shape: f32[128,128], index: 6, kind: input, shape index: {}]   ;;  %s1659_s7 = inlined_call_operand.hbm [shape: f32[128,128], index: 7, kind: input, shape index: {}]   ;;  %s1660_s8 = inlined_call_operand.hbm [shape: f32[128,128], index: 8, kind: input, shape index: {}]   ;;  %s1661_s9 = inlined_call_operand.vmem [shape: f32[8,128], index: 9, kind: input, shape index: {}]   ;;  %s1662_s10 = inlined_call_operand.hbm [shape: f32[8,128], index: 10, kind: output, shape index: {}]  }
   0x1   :  { %16 = vsyncpa [#allocation7], 0 }
   0x2   :  { %17 = vsyncpa [#allocation10], 0 }
   0x3   :  { %18 = vsyncpa [#allocation13], 0 }
   0x4   :  { %19 = vsyncpa [#allocation16], 0 }
   0x5   :  { %20 = vsyncpa [#allocation5], 0  ;;  %s1436_s13 = smov [#allocation6]  }
   0x6   :  { %s37_s14 = sshll.u32 %s1436_s13, 4  ;;  %s38_s14 = int_to_ptr.vmem [resolvable:$true] %s37_s14 }
   0x7   :  { %s1232_s15 = scalar_lea.vmem %s38_s14, 128  ;;  %p1237_p1 = scmp.lt.s32.totalorder %s38_s14, %s38_s14 }
   0x8   :  { %p1233_p0 = scmp.ne.s32.totalorder %s38_s14, %s1232_s15  ;;  %p1238_p2 = scmp.lt.s32.totalorder %s1232_s15, %s1232_s15 }
   0xa   :  { %p1239_p3 = por %p1238_p2, %p1237_p1 }
   0xc   :  { %p1240_p4 = pnand %p1239_p3, %p1233_p0 }
   0xe   :  { %1243 = shalt.err (!%p1240_p4)
}
   0xf   :  { %40 = dma.hbm_to_vmem [thread:$0]  %s1653_s1, 128, %s38_s14, [#allocation7]  }
  0x10   :  { %s1437_s18 = smov [#allocation9]   ;;  %s1438_s20 = smov [#allocation12]  }
  0x11   :  { %s58_s19 = sshll.u32 %s1437_s18, 4  ;;  %s82_s21 = sshll.u32 %s1438_s20, 4  ;;  %s59_s19 = int_to_ptr.vmem [resolvable:$true] %s58_s19  ;;  %s83_s21 = int_to_ptr.vmem [resolvable:$true] %s82_s21 }
  0x12   :  { %s1252_s22 = scalar_lea.vmem %s59_s19, 2048  ;;  %p1257_p6 = scmp.lt.s32.totalorder %s59_s19, %s59_s19 }
  0x13   :  { %p1253_p5 = scmp.ne.s32.totalorder %s59_s19, %s1252_s22  ;;  %p1258_p7 = scmp.lt.s32.totalorder %s1252_s22, %s1252_s22 }
  0x15   :  { %p1259_p8 = por %p1258_p7, %p1257_p6 }
  0x17   :  { %p1260_p9 = pnand %p1259_p8, %p1253_p5 }
  0x19   :  { %1263 = shalt.err (!%p1260_p9)
}
  0x1a   :  { %s1439_s23 = smov 128   ;;  %s1440_s24 = smov 8  }
  0x1b   :  { %64 = dma.hbm_to_vmem [thread:$0]  %s1655_s3, 2048, %s59_s19, [#allocation10], %s1439_s23, %s1439_s23, %s1440_s24  }
  0x1c   :  { %s1272_s1 = scalar_lea.vmem %s83_s21, 2048  ;;  %p1277_p11 = scmp.lt.s32.totalorder %s83_s21, %s83_s21 }
  0x1d   :  { %p1273_p10 = scmp.ne.s32.totalorder %s83_s21, %s1272_s1  ;;  %p1278_p12 = scmp.lt.s32.totalorder %s1272_s1, %s1272_s1 }
  0x1f   :  { %p1279_p13 = por %p1278_p12, %p1277_p11 }
  0x21   :  { %p1280_p0 = pnand %p1279_p13, %p1273_p10 }
  0x23   :  { %1283 = shalt.err (!%p1280_p0)
}
  0x24   :  { %88 = dma.hbm_to_vmem [thread:$0]  %s1657_s5, 2048, %s83_s21, [#allocation13], %s1439_s23, %s1439_s23, %s1440_s24  }
  0x25   :  { %s1441_s29 = smov [#allocation15]   ;;  %s1442_s11 = smov [#allocation3]  }
  0x26   :  { %s106_s30 = sshll.u32 %s1441_s29, 4  ;;  %s27_s3 = sshll.u32 %s1442_s11, 4  ;;  %s107_s30 = int_to_ptr.vmem [resolvable:$true] %s106_s30  ;;  %s28_s3 = int_to_ptr.vmem [resolvable:$true] %s27_s3 }
  0x27   :  { %s1292_s12 = scalar_lea.vmem %s107_s30, 2048  ;;  %p1297_p2 = scmp.lt.s32.totalorder %s107_s30, %s107_s30 }
  0x28   :  { %p1293_p1 = scmp.ne.s32.totalorder %s107_s30, %s1292_s12  ;;  %p1298_p3 = scmp.lt.s32.totalorder %s1292_s12, %s1292_s12 }
  0x2a   :  { %p1299_p4 = por %p1298_p3, %p1297_p2 }
  0x2c   :  { %p1300_p5 = pnand %p1299_p4, %p1293_p1 }
  0x2e   :  { %1303 = shalt.err (!%p1300_p5)
}
  0x2f   :  { %112 = dma.hbm_to_vmem [thread:$0]  %s1659_s7, 2048, %s107_s30, [#allocation16], %s1439_s23, %s1439_s23, %s1440_s24  }
  0x30   :  { %s1312_s5 = scalar_lea.vmem %s28_s3, 128  ;;  %p1317_p7 = scmp.lt.s32.totalorder %s28_s3, %s28_s3 }
  0x31   :  { %p1313_p6 = scmp.ne.s32.totalorder %s28_s3, %s1312_s5  ;;  %p1318_p8 = scmp.lt.s32.totalorder %s1312_s5, %s1312_s5 }
  0x33   :  { %p1319_p9 = por %p1318_p8, %p1317_p7 }
  0x35   :  { %p1320_p10 = pnand %p1319_p9, %p1313_p6 }
  0x37   :  { %1323 = shalt.err (!%p1320_p10)
}
  0x38   :  { %30 = dma.hbm_to_vmem [thread:$0]  %s1652_s0, 128, %s28_s3, [#allocation4]  }
  0x39   :  { %s1443_s17 = smov [#allocation8]   ;;  %s1444_s19 = smov [#allocation11]  }
  0x3a   :  { %s46_s18 = sshll.u32 %s1443_s17, 4  ;;  %s70_s20 = sshll.u32 %s1444_s19, 4  ;;  %s47_s18 = int_to_ptr.vmem [resolvable:$true] %s46_s18  ;;  %s71_s20 = int_to_ptr.vmem [resolvable:$true] %s70_s20 }
  0x3b   :  { %s1332_s21 = scalar_lea.vmem %s47_s18, 2048  ;;  %p1337_p12 = scmp.lt.s32.totalorder %s47_s18, %s47_s18 }
  0x3c   :  { %p1333_p11 = scmp.ne.s32.totalorder %s47_s18, %s1332_s21  ;;  %p1338_p13 = scmp.lt.s32.totalorder %s1332_s21, %s1332_s21 }
  0x3e   :  { %p1339_p0 = por %p1338_p13, %p1337_p12 }
  0x40   :  { %p1340_p1 = pnand %p1339_p0, %p1333_p11 }
  0x42   :  { %1343 = shalt.err (!%p1340_p1)
}
  0x43   :  { %52 = dma.hbm_to_vmem [thread:$0]  %s1654_s2, 2048, %s47_s18, [#allocation7], %s1439_s23, %s1439_s23, %s1440_s24  }
  0x44   :  { %s1352_s0 = scalar_lea.vmem %s71_s20, 2048  ;;  %p1357_p3 = scmp.lt.s32.totalorder %s71_s20, %s71_s20 }
  0x45   :  { %p1353_p2 = scmp.ne.s32.totalorder %s71_s20, %s1352_s0  ;;  %p1358_p4 = scmp.lt.s32.totalorder %s1352_s0, %s1352_s0 }
  0x47   :  { %p1359_p5 = por %p1358_p4, %p1357_p3 }
  0x49   :  { %p1360_p6 = pnand %p1359_p5, %p1353_p2 }
  0x4b   :  { %1363 = shalt.err (!%p1360_p6)
}
  0x4c   :  { %76 = dma.hbm_to_vmem [thread:$0]  %s1656_s4, 2048, %s71_s20, [#allocation10], %s1439_s23, %s1439_s23, %s1440_s24  }
  0x4d   :  { %s1445_s1 = smov [#allocation14]   ;;  %s1446_s28 = smov [#allocation17]  }
  0x4e   :  { %s94_s27 = sshll.u32 %s1445_s1, 4  ;;  %s118_s2 = sshll.u32 %s1446_s28, 4  ;;  %s95_s27 = int_to_ptr.vmem [resolvable:$true] %s94_s27  ;;  %s119_s2 = int_to_ptr.vmem [resolvable:$true] %s118_s2 }
  0x4f   :  { %s1372_s29 = scalar_lea.vmem %s95_s27, 2048  ;;  %p1377_p8 = scmp.lt.s32.totalorder %s95_s27, %s95_s27 }
  0x50   :  { %p1373_p7 = scmp.ne.s32.totalorder %s95_s27, %s1372_s29  ;;  %p1378_p9 = scmp.lt.s32.totalorder %s1372_s29, %s1372_s29 }
  0x52   :  { %p1379_p10 = por %p1378_p9, %p1377_p8 }
  0x54   :  { %p1380_p11 = pnand %p1379_p10, %p1373_p7 }
  0x56   :  { %1383 = shalt.err (!%p1380_p11)
}
  0x57   :  { %100 = dma.hbm_to_vmem [thread:$0]  %s1658_s6, 2048, %s95_s27, [#allocation13], %s1439_s23, %s1439_s23, %s1440_s24  }
  0x58   :  { %s1392_s4 = scalar_lea.vmem %s119_s2, 2048  ;;  %p1397_p13 = scmp.lt.s32.totalorder %s119_s2, %s119_s2 }
  0x59   :  { %p1393_p12 = scmp.ne.s32.totalorder %s119_s2, %s1392_s4  ;;  %p1398_p0 = scmp.lt.s32.totalorder %s1392_s4, %s1392_s4 }
  0x5b   :  { %p1399_p1 = por %p1398_p0, %p1397_p13 }
  0x5d   :  { %p1400_p2 = pnand %p1399_p1, %p1393_p12 }
  0x5f   :  { %1403 = shalt.err (!%p1400_p2)
}
  0x60   :  { %124 = dma.hbm_to_vmem [thread:$0]  %s1660_s8, 2048, %s119_s2, [#allocation16], %s1439_s23, %s1439_s23, %s1440_s24  }
  0x61   :  { %1424 = dma.done.wait [#allocation4], 128  }
  0x62   :  { %1425 = vsyncadd [#allocation4], 4294967168 }
  0x63   :  { %1426 = dma.done.wait [#allocation7], 2176  }
  0x64   :  { %1427 = vsyncadd [#allocation7], 4294965120 }
  0x65   :  { %1428 = dma.done.wait [#allocation10], 4096  }
  0x66   :  { %1429 = vsyncadd [#allocation10], 4294963200 }
  0x67   :  { %1430 = dma.done.wait [#allocation13], 4096  }
  0x68   :  { %1431 = vsyncadd [#allocation13], 4294963200 }
  0x69   :  { %1432 = dma.done.wait [#allocation16], 4096  }
  0x6a   :  { %1433 = vsyncadd [#allocation16], 4294963200  ;;  %v1447_v0 = vmov 0.0   ;;  %vm1448_vm0 = vmmov 0   ;;  %v192_v1 = vld [vmem:[#allocation9 + $0x78] sm:$0xff]  ;;  %v191_v3 = vld [vmem:[#allocation9 + $0x70] sm:$0xff] }
  0x6b   :  { %957 = vmatprep.subr.mxu0 %v1447_v0  ;;  %992 = vmatprep.subr.mxu1 %v1447_v0  ;;  %v176_v2 = vld [vmem:[#allocation8 + $0x78] sm:$0xff]  ;;  %v175_v4 = vld [vmem:[#allocation8 + $0x70] sm:$0xff]  ;;  %v190_v5 = vld [vmem:[#allocation9 + $0x68] sm:$0xff]  ;;  %s1449_s18 = smov [#allocation18]  }
  0x6c   :  { %989 = vmatprep.mubr.msk.f32.mxu0 %vm1448_vm0, %v1447_v0  ;;  %1024 = vmatprep.mubr.msk.f32.mxu1 %vm1448_vm0, %v1447_v0  ;;  %v174_v6 = vld [vmem:[#allocation8 + $0x68] sm:$0xff]  ;;  %v189_v7 = vld [vmem:[#allocation9 + $0x60] sm:$0xff]  ;;  %v188_v9 = vld [vmem:[#allocation9 + $0x58] sm:$0xff]  ;;  %s817_s19 = sshll.u32 %s1449_s18, 4  ;;  %s818_s19 = int_to_ptr.vmem [resolvable:$true] %s817_s19 }
  0x6d   :  { %958 = vmatpush3.msra.mxu0 %v192_v1  ;;  %993 = vmatpush3.msra.mxu1 %v176_v2  ;;  %v173_v8 = vld [vmem:[#allocation8 + $0x60] sm:$0xff]  ;;  %v172_v10 = vld [vmem:[#allocation8 + $0x58] sm:$0xff]  ;;  %v187_v11 = vld [vmem:[#allocation9 + $0x50] sm:$0xff]  ;;  %s1404_s20 = scalar_lea.vmem %s818_s19, 128  ;;  %p1409_p4 = scmp.lt.s32.totalorder %s818_s19, %s818_s19 }
  0x6e   :  { %959 = vmatprep.subr.mxu0 %v1447_v0  ;;  %994 = vmatprep.subr.mxu1 %v1447_v0  ;;  %v171_v12 = vld [vmem:[#allocation8 + $0x50] sm:$0xff]  ;;  %v186_v13 = vld [vmem:[#allocation9 + $0x48] sm:$0xff]  ;;  %v185_v15 = vld [vmem:[#allocation9 + $0x40] sm:$0xff]  ;;  %p1405_p3 = scmp.ne.s32.totalorder %s818_s19, %s1404_s20  ;;  %p1410_p5 = scmp.lt.s32.totalorder %s1404_s20, %s1404_s20 }
  0x6f   :  { %960 = vmatpush3.msra.mxu0 %v191_v3  ;;  %995 = vmatpush3.msra.mxu1 %v175_v4  ;;  %v170_v14 = vld [vmem:[#allocation8 + $0x48] sm:$0xff]  ;;  %v169_v16 = vld [vmem:[#allocation8 + $0x40] sm:$0xff]  ;;  %v184_v17 = vld [vmem:[#allocation9 + $0x38] sm:$0xff] }
  0x70   :  { %961 = vmatprep.subr.mxu0 %v1447_v0  ;;  %996 = vmatprep.subr.mxu1 %v1447_v0  ;;  %v168_v18 = vld [vmem:[#allocation8 + $0x38] sm:$0xff]  ;;  %v183_v19 = vld [vmem:[#allocation9 + $0x30] sm:$0xff]  ;;  %v182_v21 = vld [vmem:[#allocation9 + $0x28] sm:$0xff]  ;;  %p1411_p6 = por %p1410_p5, %p1409_p4 }
  0x71   :  { %962 = vmatpush3.msra.mxu0 %v190_v5  ;;  %997 = vmatpush3.msra.mxu1 %v174_v6  ;;  %v167_v20 = vld [vmem:[#allocation8 + $0x30] sm:$0xff]  ;;  %v166_v22 = vld [vmem:[#allocation8 + $0x28] sm:$0xff]  ;;  %v181_v23 = vld [vmem:[#allocation9 + $0x20] sm:$0xff] }
  0x72   :  { %963 = vmatprep.subr.mxu0 %v1447_v0  ;;  %998 = vmatprep.subr.mxu1 %v1447_v0  ;;  %v165_v24 = vld [vmem:[#allocation8 + $0x20] sm:$0xff]  ;;  %v180_v25 = vld [vmem:[#allocation9 + $0x18] sm:$0xff]  ;;  %v179_v27 = vld [vmem:[#allocation9 + $0x10] sm:$0xff]  ;;  %p1412_p7 = pnand %p1411_p6, %p1405_p3 }
  0x73   :  { %964 = vmatpush3.msra.mxu0 %v189_v7  ;;  %999 = vmatpush3.msra.mxu1 %v173_v8  ;;  %v164_v26 = vld [vmem:[#allocation8 + $0x18] sm:$0xff]  ;;  %v163_v28 = vld [vmem:[#allocation8 + $0x10] sm:$0xff]  ;;  %v178_v29 = vld [vmem:[#allocation9 + $0x8] sm:$0xff] }
  0x74   :  { %965 = vmatprep.subr.mxu0 %v1447_v0  ;;  %1000 = vmatprep.subr.mxu1 %v1447_v0  ;;  %v162_v30 = vld [vmem:[#allocation8 + $0x8] sm:$0xff]  ;;  %v177_v31 = vld [vmem:[#allocation9] sm:$0xff]  ;;  %v1587_v33 = vld [vmem:[#allocation6] sm:$0xff] }
  0x75   :  { %966 = vmatpush3.msra.mxu0 %v188_v9  ;;  %1001 = vmatpush3.msra.mxu1 %v172_v10  ;;  %v161_v32 = vld [vmem:[#allocation8] sm:$0xff]  ;;  %v1589_v34 = vld [vmem:[#allocation3] sm:$0xff]  ;;  %v358_v35 = vld [vmem:[#allocation11 + $0x78] sm:$0xff] }
  0x76   :  { %967 = vmatprep.subr.mxu0 %v1447_v0  ;;  %1002 = vmatprep.subr.mxu1 %v1447_v0  ;;  %v357_v36 = vld [vmem:[#allocation11 + $0x70] sm:$0xff]  ;;  %v356_v37 = vld [vmem:[#allocation11 + $0x68] sm:$0xff]  ;;  %v355_v38 = vld [vmem:[#allocation11 + $0x60] sm:$0xff] }
  0x77   :  { %968 = vmatpush3.msra.mxu0 %v187_v11  ;;  %1003 = vmatpush3.msra.mxu1 %v171_v12  ;;  %v354_v39 = vld [vmem:[#allocation11 + $0x58] sm:$0xff]  ;;  %v353_v40 = vld [vmem:[#allocation11 + $0x50] sm:$0xff]  ;;  %v352_v41 = vld [vmem:[#allocation11 + $0x48] sm:$0xff] }
  0x78   :  { %969 = vmatprep.subr.mxu0 %v1447_v0  ;;  %1004 = vmatprep.subr.mxu1 %v1447_v0  ;;  %v351_v42 = vld [vmem:[#allocation11 + $0x40] sm:$0xff]  ;;  %v350_v43 = vld [vmem:[#allocation11 + $0x38] sm:$0xff]  ;;  %v349_v44 = vld [vmem:[#allocation11 + $0x30] sm:$0xff] }
  0x79   :  { %970 = vmatpush3.msra.mxu0 %v186_v13  ;;  %1005 = vmatpush3.msra.mxu1 %v170_v14  ;;  %v348_v45 = vld [vmem:[#allocation11 + $0x28] sm:$0xff]  ;;  %v347_v46 = vld [vmem:[#allocation11 + $0x20] sm:$0xff]  ;;  %v346_v47 = vld [vmem:[#allocation11 + $0x18] sm:$0xff] }
  0x7a   :  { %971 = vmatprep.subr.mxu0 %v1447_v0  ;;  %1006 = vmatprep.subr.mxu1 %v1447_v0  ;;  %v345_v48 = vld [vmem:[#allocation11 + $0x10] sm:$0xff]  ;;  %v344_v49 = vld [vmem:[#allocation11 + $0x8] sm:$0xff]  ;;  %v343_v50 = vld [vmem:[#allocation11] sm:$0xff] }
  0x7b   :  { %972 = vmatpush3.msra.mxu0 %v185_v15  ;;  %1007 = vmatpush3.msra.mxu1 %v169_v16  ;;  %v455_v51 = vld [vmem:[#allocation12 + $0x78] sm:$0xff]  ;;  %v454_v52 = vld [vmem:[#allocation12 + $0x70] sm:$0xff]  ;;  %v453_v53 = vld [vmem:[#allocation12 + $0x68] sm:$0xff] }
  0x7c   :  { %973 = vmatprep.subr.mxu0 %v1447_v0  ;;  %1008 = vmatprep.subr.mxu1 %v1447_v0  ;;  %v452_v54 = vld [vmem:[#allocation12 + $0x60] sm:$0xff]  ;;  %v451_v55 = vld [vmem:[#allocation12 + $0x58] sm:$0xff]  ;;  %v450_v56 = vld [vmem:[#allocation12 + $0x50] sm:$0xff] }
  0x7d   :  { %974 = vmatpush3.msra.mxu0 %v184_v17  ;;  %1009 = vmatpush3.msra.mxu1 %v168_v18  ;;  %v830_v58 = vld [vmem:[%s1661_s9] ss:$0 sm:$0xff]  ;;  %v449_v2 = vld [vmem:[#allocation12 + $0x48] sm:$0xff]  ;;  %v448_v3 = vld [vmem:[#allocation12 + $0x40] sm:$0xff] }
  0x7e   :  { %975 = vmatprep.subr.mxu0 %v1447_v0  ;;  %1010 = vmatprep.subr.mxu1 %v1447_v0  ;;  %v447_v4 = vld [vmem:[#allocation12 + $0x38] sm:$0xff]  ;;  %v446_v5 = vld [vmem:[#allocation12 + $0x30] sm:$0xff]  ;;  %v445_v6 = vld [vmem:[#allocation12 + $0x28] sm:$0xff] }
  0x7f   :  { %976 = vmatpush3.msra.mxu0 %v183_v19  ;;  %1011 = vmatpush3.msra.mxu1 %v167_v20  ;;  %v444_v7 = vld [vmem:[#allocation12 + $0x20] sm:$0xff]  ;;  %v443_v8 = vld [vmem:[#allocation12 + $0x18] sm:$0xff]  ;;  %v442_v9 = vld [vmem:[#allocation12 + $0x10] sm:$0xff] }
  0x80   :  { %977 = vmatprep.subr.mxu0 %v1447_v0  ;;  %1012 = vmatprep.subr.mxu1 %v1447_v0  ;;  %v441_v10 = vld [vmem:[#allocation12 + $0x8] sm:$0xff]  ;;  %v440_v11 = vld [vmem:[#allocation12] sm:$0xff]  ;;  %v552_v12 = vld [vmem:[#allocation14 + $0x78] sm:$0xff] }
  0x81   :  { %978 = vmatpush3.msra.mxu0 %v182_v21  ;;  %1013 = vmatpush3.msra.mxu1 %v166_v22  ;;  %v551_v13 = vld [vmem:[#allocation14 + $0x70] sm:$0xff]  ;;  %v550_v14 = vld [vmem:[#allocation14 + $0x68] sm:$0xff]  ;;  %v549_v15 = vld [vmem:[#allocation14 + $0x60] sm:$0xff] }
  0x82   :  { %979 = vmatprep.subr.mxu0 %v1447_v0  ;;  %1014 = vmatprep.subr.mxu1 %v1447_v0  ;;  %v548_v16 = vld [vmem:[#allocation14 + $0x58] sm:$0xff]  ;;  %v547_v17 = vld [vmem:[#allocation14 + $0x50] sm:$0xff] }
  0x83   :  { %980 = vmatpush3.msra.mxu0 %v181_v23  ;;  %1015 = vmatpush3.msra.mxu1 %v165_v24  ;;  %v831_v18 = vld [vmem:[%s1661_s9 + $0x1] ss:$0 sm:$0xff] }
  0x84   :  { %981 = vmatprep.subr.mxu0 %v1447_v0  ;;  %1016 = vmatprep.subr.mxu1 %v1447_v0 }
  0x85   :  { %982 = vmatpush3.msra.mxu0 %v180_v25  ;;  %1017 = vmatpush3.msra.mxu1 %v164_v26  ;;  %v546_v25 = vld [vmem:[#allocation14 + $0x48] sm:$0xff]  ;;  %v545_v26 = vld [vmem:[#allocation14 + $0x40] sm:$0xff] }
  0x86   :  { %983 = vmatprep.subr.mxu0 %v1447_v0  ;;  %1018 = vmatprep.subr.mxu1 %v1447_v0 }
  0x87   :  { %984 = vmatpush3.msra.mxu0 %v179_v27  ;;  %1019 = vmatpush3.msra.mxu1 %v163_v28  ;;  %v544_v27 = vld [vmem:[#allocation14 + $0x38] sm:$0xff]  ;;  %v543_v28 = vld [vmem:[#allocation14 + $0x30] sm:$0xff] }
  0x88   :  { %985 = vmatprep.subr.mxu0 %v1447_v0  ;;  %1020 = vmatprep.subr.mxu1 %v1447_v0 }
  0x89   :  { %986 = vmatpush3.msra.mxu0 %v178_v29  ;;  %1021 = vmatpush3.msra.mxu1 %v162_v30  ;;  %v542_v29 = vld [vmem:[#allocation14 + $0x28] sm:$0xff]  ;;  %v541_v30 = vld [vmem:[#allocation14 + $0x20] sm:$0xff] }
  0x8a   :  { %987 = vmatprep.subr.mxu0 %v1447_v0  ;;  %1022 = vmatprep.subr.mxu1 %v1447_v0 }
  0x8b   :  { %988 = vmatpush3.msra.mxu0 %v177_v31  ;;  %1023 = vmatpush3.msra.mxu1 %v161_v32  ;;  %v540_v31 = vld [vmem:[#allocation14 + $0x18] sm:$0xff]  ;;  %v539_v32 = vld [vmem:[#allocation14 + $0x10] sm:$0xff] }
  0x8c   :  { %990 = vmatmul.mubr.f32.vlgmr.msra.gmra.mxu0 %v1587_v33  ;;  %1025 = vmatmul.mubr.f32.vlgmr.msra.gmra.mxu1 %v1589_v34 }
  0x8d   :  { %1027 = vmatprep.subr.mxu0 %v358_v35  ;;  %1062 = vmatprep.subr.mxu1 %v455_v51 }
  0x8e   :  { %1028 = vmatpush3.msra.mxu0 %v358_v35  ;;  %1063 = vmatpush3.msra.mxu1 %v455_v51  ;;  %v537_v35 = vld [vmem:[#allocation14] sm:$0xff] }
  0x8f   :  { %1029 = vmatprep.subr.mxu0 %v357_v36  ;;  %1064 = vmatprep.subr.mxu1 %v454_v52 }
  0x90   :  { %1030 = vmatpush3.msra.mxu0 %v357_v36  ;;  %1065 = vmatpush3.msra.mxu1 %v454_v52  ;;  %v663_v36 = vld [vmem:[#allocation17 + $0x78] sm:$0xff] }
  0x91   :  { %1031 = vmatprep.subr.mxu0 %v356_v37  ;;  %1066 = vmatprep.subr.mxu1 %v453_v53 }
  0x92   :  { %1032 = vmatpush3.msra.mxu0 %v356_v37  ;;  %1067 = vmatpush3.msra.mxu1 %v453_v53  ;;  %v662_v37 = vld [vmem:[#allocation17 + $0x70] sm:$0xff] }
  0x93   :  { %1033 = vmatprep.subr.mxu0 %v355_v38  ;;  %1068 = vmatprep.subr.mxu1 %v452_v54 }
  0x94   :  { %1034 = vmatpush3.msra.mxu0 %v355_v38  ;;  %1069 = vmatpush3.msra.mxu1 %v452_v54  ;;  %v661_v38 = vld [vmem:[#allocation17 + $0x68] sm:$0xff] }
  0x95   :  { %1035 = vmatprep.subr.mxu0 %v354_v39  ;;  %1070 = vmatprep.subr.mxu1 %v451_v55 }
  0x96   :  { %1036 = vmatpush3.msra.mxu0 %v354_v39  ;;  %1071 = vmatpush3.msra.mxu1 %v451_v55  ;;  %v660_v39 = vld [vmem:[#allocation17 + $0x60] sm:$0xff] }
  0x97   :  { %1037 = vmatprep.subr.mxu0 %v353_v40  ;;  %1072 = vmatprep.subr.mxu1 %v450_v56 }
  0x98   :  { %1038 = vmatpush3.msra.mxu0 %v353_v40  ;;  %1073 = vmatpush3.msra.mxu1 %v450_v56  ;;  %v659_v40 = vld [vmem:[#allocation17 + $0x58] sm:$0xff] }
  0x99   :  { %1039 = vmatprep.subr.mxu0 %v352_v41  ;;  %1074 = vmatprep.subr.mxu1 %v449_v2  ;;  %v647_v56 = vld [vmem:[#allocation15 + $0x78] sm:$0xff] }
  0x9a   :  { %1040 = vmatpush3.msra.mxu0 %v352_v41  ;;  %1075 = vmatpush3.msra.mxu1 %v449_v2  ;;  %v658_v41 = vld [vmem:[#allocation17 + $0x50] sm:$0xff]  ;;  %v639_v2 = vld [vmem:[#allocation15 + $0x38] sm:$0xff] }
  0x9b   :  { %1041 = vmatprep.subr.mxu0 %v351_v42  ;;  %1076 = vmatprep.subr.mxu1 %v448_v3 }
  0x9c   :  { %1042 = vmatpush3.msra.mxu0 %v351_v42  ;;  %1077 = vmatpush3.msra.mxu1 %v448_v3  ;;  %v657_v42 = vld [vmem:[#allocation17 + $0x48] sm:$0xff]  ;;  %v638_v3 = vld [vmem:[#allocation15 + $0x30] sm:$0xff] }
  0x9d   :  { %1043 = vmatprep.subr.mxu0 %v350_v43  ;;  %1078 = vmatprep.subr.mxu1 %v447_v4 }
  0x9e   :  { %1044 = vmatpush3.msra.mxu0 %v350_v43  ;;  %1079 = vmatpush3.msra.mxu1 %v447_v4  ;;  %v656_v43 = vld [vmem:[#allocation17 + $0x40] sm:$0xff]  ;;  %v637_v4 = vld [vmem:[#allocation15 + $0x28] sm:$0xff] }
  0x9f   :  { %1045 = vmatprep.subr.mxu0 %v349_v44  ;;  %1080 = vmatprep.subr.mxu1 %v446_v5 }
  0xa0   :  { %1046 = vmatpush3.msra.mxu0 %v349_v44  ;;  %1081 = vmatpush3.msra.mxu1 %v446_v5  ;;  %v655_v44 = vld [vmem:[#allocation17 + $0x38] sm:$0xff]  ;;  %v636_v5 = vld [vmem:[#allocation15 + $0x20] sm:$0xff] }
  0xa1   :  { %1047 = vmatprep.subr.mxu0 %v348_v45  ;;  %1082 = vmatprep.subr.mxu1 %v445_v6 }
  0xa2   :  { %1048 = vmatpush3.msra.mxu0 %v348_v45  ;;  %1083 = vmatpush3.msra.mxu1 %v445_v6  ;;  %v654_v45 = vld [vmem:[#allocation17 + $0x30] sm:$0xff]  ;;  %v635_v6 = vld [vmem:[#allocation15 + $0x18] sm:$0xff] }
  0xa3   :  { %1049 = vmatprep.subr.mxu0 %v347_v46  ;;  %1084 = vmatprep.subr.mxu1 %v444_v7 }
  0xa4   :  { %1050 = vmatpush3.msra.mxu0 %v347_v46  ;;  %1085 = vmatpush3.msra.mxu1 %v444_v7  ;;  %v653_v46 = vld [vmem:[#allocation17 + $0x28] sm:$0xff] }
  0xa5   :  { %1051 = vmatprep.subr.mxu0 %v346_v47  ;;  %1086 = vmatprep.subr.mxu1 %v443_v8  ;;  %v649_v7 = vld [vmem:[#allocation17 + $0x8] sm:$0xff] }
  0xa6   :  { %1052 = vmatpush3.msra.mxu0 %v346_v47  ;;  %1087 = vmatpush3.msra.mxu1 %v443_v8  ;;  %v652_v47 = vld [vmem:[#allocation17 + $0x20] sm:$0xff]  ;;  %v634_v8 = vld [vmem:[#allocation15 + $0x10] sm:$0xff] }
  0xa7   :  { %1053 = vmatprep.subr.mxu0 %v345_v48  ;;  %1088 = vmatprep.subr.mxu1 %v442_v9 }
  0xa8   :  { %1054 = vmatpush3.msra.mxu0 %v345_v48  ;;  %1089 = vmatpush3.msra.mxu1 %v442_v9  ;;  %v651_v48 = vld [vmem:[#allocation17 + $0x18] sm:$0xff]  ;;  %v648_v9 = vld [vmem:[#allocation17] sm:$0xff] }
  0xa9   :  { %1055 = vmatprep.subr.mxu0 %v344_v49  ;;  %1090 = vmatprep.subr.mxu1 %v441_v10 }
  0xaa   :  { %1056 = vmatpush3.msra.mxu0 %v344_v49  ;;  %1091 = vmatpush3.msra.mxu1 %v441_v10  ;;  %v650_v49 = vld [vmem:[#allocation17 + $0x10] sm:$0xff]  ;;  %v633_v10 = vld [vmem:[#allocation15 + $0x8] sm:$0xff] }
  0xab   :  { %1057 = vmatprep.subr.mxu0 %v343_v50  ;;  %1092 = vmatprep.subr.mxu1 %v440_v11 }
  0xac   :  { %1058 = vmatpush3.msra.mxu0 %v343_v50  ;;  %1093 = vmatpush3.msra.mxu1 %v440_v11  ;;  %v832_v50 = vld [vmem:[%s1661_s9 + $0x2] ss:$0 sm:$0xff]  ;;  %v632_v11 = vld [vmem:[#allocation15] sm:$0xff] }
  0xad   :  { %1132 = vmatprep.subr.mxu1 %v1447_v0  ;;  %1097 = vmatprep.subr.mxu0 %v552_v12 }
 0x14c   :  { %v259_v57 = vpop.f32.mrf.mxu0  ;;  %v329_v59 = vpop.f32.mrf.mxu1 }
 0x14d   :  { %v330_v60 = vadd.f32 %v329_v59, %v259_v57  ;;  %v645_v59 = vld [vmem:[#allocation15 + $0x68] sm:$0xff] }
 0x14e   :  { %v991_v61 = vpop.f32.mrf.mxu0  ;;  %v1026_v62 = vpop.f32.mrf.mxu1 }
 0x14f   :  { %v337_v63 = vadd.f32 %v830_v58, %v330_v60  ;;  %v646_v58 = vld [vmem:[#allocation15 + $0x70] sm:$0xff]  ;;  %v644_v60 = vld [vmem:[#allocation15 + $0x60] sm:$0xff]  ;;  %v643_v61 = vld [vmem:[#allocation15 + $0x58] sm:$0xff] }
 0x150   :  { %v642_v62 = vld [vmem:[#allocation15 + $0x50] sm:$0xff] }
 0x151   :  { %v338_v1 = vadd.f32 %v337_v63, %v1589_v34  ;;  %v641_v63 = vld [vmem:[#allocation15 + $0x48] sm:$0xff] }
 0x153   :  { %1059 = vmatprep.mubr.f32.mxu0 %v338_v1  ;;  %v640_v1 = vld [vmem:[#allocation15 + $0x40] sm:$0xff] }
 0x154   :  { %1060 = vmatmul.mubr.f32.vlgmr.msra.gmra.mxu0 %v1589_v34  ;;  %v538_v34 = vld [vmem:[#allocation14 + $0x8] sm:$0xff] }
 0x155   :  { %1098 = vmatpush3.msra.mxu0 %v552_v12  ;;  %v833_v12 = vld [vmem:[%s1661_s9 + $0x3] ss:$0 sm:$0xff] }
 0x156   :  { %1099 = vmatprep.subr.mxu0 %v551_v13 }
 0x157   :  { %1100 = vmatpush3.msra.mxu0 %v551_v13 }
 0x158   :  { %1101 = vmatprep.subr.mxu0 %v550_v14 }
 0x159   :  { %1102 = vmatpush3.msra.mxu0 %v550_v14 }
 0x15a   :  { %1103 = vmatprep.subr.mxu0 %v549_v15 }
 0x15b   :  { %1104 = vmatpush3.msra.mxu0 %v549_v15 }
 0x15c   :  { %1105 = vmatprep.subr.mxu0 %v548_v16 }
 0x15d   :  { %1106 = vmatpush3.msra.mxu0 %v548_v16 }
 0x15e   :  { %1107 = vmatprep.subr.mxu0 %v547_v17 }
 0x15f   :  { %1108 = vmatpush3.msra.mxu0 %v547_v17 }
 0x160   :  { %1109 = vmatprep.subr.mxu0 %v546_v25 }
 0x161   :  { %1110 = vmatpush3.msra.mxu0 %v546_v25 }
 0x162   :  { %1111 = vmatprep.subr.mxu0 %v545_v26 }
 0x163   :  { %1112 = vmatpush3.msra.mxu0 %v545_v26 }
 0x164   :  { %1113 = vmatprep.subr.mxu0 %v544_v27 }
 0x165   :  { %1114 = vmatpush3.msra.mxu0 %v544_v27 }
 0x166   :  { %1115 = vmatprep.subr.mxu0 %v543_v28 }
 0x167   :  { %1116 = vmatpush3.msra.mxu0 %v543_v28 }
 0x168   :  { %1117 = vmatprep.subr.mxu0 %v542_v29 }
 0x169   :  { %1118 = vmatpush3.msra.mxu0 %v542_v29 }
 0x16a   :  { %1119 = vmatprep.subr.mxu0 %v541_v30 }
 0x16b   :  { %1120 = vmatpush3.msra.mxu0 %v541_v30 }
 0x16c   :  { %1121 = vmatprep.subr.mxu0 %v540_v31 }
 0x16d   :  { %1122 = vmatpush3.msra.mxu0 %v540_v31 }
 0x16e   :  { %1123 = vmatprep.subr.mxu0 %v539_v32 }
 0x16f   :  { %1124 = vmatpush3.msra.mxu0 %v539_v32 }
 0x170   :  { %1125 = vmatprep.subr.mxu0 %v538_v34 }
 0x171   :  { %1126 = vmatpush3.msra.mxu0 %v538_v34 }
 0x172   :  { %1127 = vmatprep.subr.mxu0 %v537_v35 }
 0x173   :  { %1128 = vmatpush3.msra.mxu0 %v537_v35 }
 0x174   :  { %1167 = vmatprep.subr.mxu0 %v1447_v0 }
 0x214   :  { %v1061_v19 = vpop.f32.mrf.mxu0 }
 0x215   :  { %v435_v20 = vadd.f32 %v1061_v19, %v831_v18  ;;  %v834_v19 = vld [vmem:[%s1661_s9 + $0x4] ss:$0 sm:$0xff] }
 0x216   :  { %v429_v21 = vpop.f32.mrf.mxu0 }
 0x217   :  { %v430_v22 = vadd.f32 %v831_v18, %v429_v21 }
 0x219   :  { %1216 = vtanh.f32 %v430_v22 }
 0x21a   :  { %1218 = vtanh.f32 %v435_v20 }
 0x226   :  { %v1217_v23 = vpop.eup %1216 }
 0x227   :  { %v1219_v24 = vpop.eup %1218  ;;  %1094 = vmatprep.mubr.f32.mxu1 %v1217_v23 }
 0x228   :  { %1095 = vmatmul.mubr.f32.vlgmr.msra.gmra.mxu1 %v1219_v24 }
 0x229   :  { %1164 = vmatprep.mubr.msk.f32.mxu1 %vm1448_vm0, %v1447_v0  ;;  %1133 = vmatpush3.msra.mxu1 %v663_v36 }
 0x22a   :  { %1134 = vmatprep.subr.mxu1 %v1447_v0 }
 0x22b   :  { %1135 = vmatpush3.msra.mxu1 %v662_v37 }
 0x22c   :  { %1136 = vmatprep.subr.mxu1 %v1447_v0 }
 0x22d   :  { %1137 = vmatpush3.msra.mxu1 %v661_v38 }
 0x22e   :  { %1138 = vmatprep.subr.mxu1 %v1447_v0 }
 0x22f   :  { %1139 = vmatpush3.msra.mxu1 %v660_v39 }
 0x230   :  { %1140 = vmatprep.subr.mxu1 %v1447_v0 }
 0x231   :  { %1141 = vmatpush3.msra.mxu1 %v659_v40 }
 0x232   :  { %1142 = vmatprep.subr.mxu1 %v1447_v0 }
 0x233   :  { %1143 = vmatpush3.msra.mxu1 %v658_v41 }
 0x234   :  { %1144 = vmatprep.subr.mxu1 %v1447_v0 }
 0x235   :  { %1145 = vmatpush3.msra.mxu1 %v657_v42 }
 0x236   :  { %1146 = vmatprep.subr.mxu1 %v1447_v0 }
 0x237   :  { %1147 = vmatpush3.msra.mxu1 %v656_v43 }
 0x238   :  { %1148 = vmatprep.subr.mxu1 %v1447_v0 }
 0x239   :  { %1149 = vmatpush3.msra.mxu1 %v655_v44 }
 0x23a   :  { %1150 = vmatprep.subr.mxu1 %v1447_v0 }
 0x23b   :  { %1151 = vmatpush3.msra.mxu1 %v654_v45 }
 0x23c   :  { %1152 = vmatprep.subr.mxu1 %v1447_v0 }
 0x23d   :  { %1153 = vmatpush3.msra.mxu1 %v653_v46 }
 0x23e   :  { %1154 = vmatprep.subr.mxu1 %v1447_v0 }
 0x23f   :  { %1155 = vmatpush3.msra.mxu1 %v652_v47 }
 0x240   :  { %1156 = vmatprep.subr.mxu1 %v1447_v0 }
 0x241   :  { %1157 = vmatpush3.msra.mxu1 %v651_v48 }
 0x242   :  { %1158 = vmatprep.subr.mxu1 %v1447_v0 }
 0x243   :  { %1159 = vmatpush3.msra.mxu1 %v650_v49 }
 0x244   :  { %1160 = vmatprep.subr.mxu1 %v1447_v0 }
 0x245   :  { %1161 = vmatpush3.msra.mxu1 %v649_v7 }
 0x246   :  { %1162 = vmatprep.subr.mxu1 %v1447_v0 }
 0x247   :  { %1163 = vmatpush3.msra.mxu1 %v648_v9 }
 0x248   :  { %1165 = vmatmul.mubr.f32.vlgmr.msra.gmra.mxu1 %v1587_v33 }
 0x2e8   :  { %v1096_v51 = vpop.f32.mrf.mxu1 }
 0x2e9   :  { %v532_v52 = vadd.f32 %v1096_v51, %v832_v50 }
 0x2ea   :  { %v526_v53 = vpop.f32.mrf.mxu1 }
 0x2eb   :  { %v527_v54 = vadd.f32 %v832_v50, %v526_v53 }
 0x2ed   :  { %1220 = vtanh.f32 %v527_v54 }
 0x2ee   :  { %1222 = vtanh.f32 %v532_v52 }
 0x2fa   :  { %v1221_v55 = vpop.eup %1220 }
 0x2fb   :  { %v1223_v57 = vpop.eup %1222  ;;  %1129 = vmatprep.mubr.f32.mxu0 %v1221_v55 }
 0x2fc   :  { %1130 = vmatmul.mubr.f32.vlgmr.msra.gmra.mxu0 %v1223_v57 }
 0x2fd   :  { %1168 = vmatpush3.msra.mxu0 %v647_v56  ;;  %1199 = vmatprep.mubr.msk.f32.mxu0 %vm1448_vm0, %v1447_v0 }
 0x2fe   :  { %1169 = vmatprep.subr.mxu0 %v1447_v0 }
 0x2ff   :  { %1170 = vmatpush3.msra.mxu0 %v646_v58 }
 0x300   :  { %1171 = vmatprep.subr.mxu0 %v1447_v0 }
 0x301   :  { %1172 = vmatpush3.msra.mxu0 %v645_v59 }
 0x302   :  { %1173 = vmatprep.subr.mxu0 %v1447_v0 }
 0x303   :  { %1174 = vmatpush3.msra.mxu0 %v644_v60 }
 0x304   :  { %1175 = vmatprep.subr.mxu0 %v1447_v0 }
 0x305   :  { %1176 = vmatpush3.msra.mxu0 %v643_v61 }
 0x306   :  { %1177 = vmatprep.subr.mxu0 %v1447_v0 }
 0x307   :  { %1178 = vmatpush3.msra.mxu0 %v642_v62 }
 0x308   :  { %1179 = vmatprep.subr.mxu0 %v1447_v0  ;;  %v730_v17 = vpop.f32.mrf.mxu1 }
 0x309   :  { %1180 = vmatpush3.msra.mxu0 %v641_v63 }
 0x30a   :  { %1181 = vmatprep.subr.mxu0 %v1447_v0  ;;  %v1166_v18 = vpop.f32.mrf.mxu1 }
 0x30b   :  { %1182 = vmatpush3.msra.mxu0 %v640_v1 }
 0x30c   :  { %1183 = vmatprep.subr.mxu0 %v1447_v0 }
 0x30d   :  { %1184 = vmatpush3.msra.mxu0 %v639_v2 }
 0x30e   :  { %1185 = vmatprep.subr.mxu0 %v1447_v0 }
 0x30f   :  { %1186 = vmatpush3.msra.mxu0 %v638_v3 }
 0x310   :  { %1187 = vmatprep.subr.mxu0 %v1447_v0 }
 0x311   :  { %1188 = vmatpush3.msra.mxu0 %v637_v4 }
 0x312   :  { %1189 = vmatprep.subr.mxu0 %v1447_v0 }
 0x313   :  { %1190 = vmatpush3.msra.mxu0 %v636_v5 }
 0x314   :  { %1191 = vmatprep.subr.mxu0 %v1447_v0 }
 0x315   :  { %1192 = vmatpush3.msra.mxu0 %v635_v6 }
 0x316   :  { %1193 = vmatprep.subr.mxu0 %v1447_v0 }
 0x317   :  { %1194 = vmatpush3.msra.mxu0 %v634_v8 }
 0x318   :  { %1195 = vmatprep.subr.mxu0 %v1447_v0 }
 0x319   :  { %1196 = vmatpush3.msra.mxu0 %v633_v10 }
 0x31a   :  { %1197 = vmatprep.subr.mxu0 %v1447_v0 }
 0x31b   :  { %1198 = vmatpush3.msra.mxu0 %v632_v11 }
 0x3bc   :  { %v1131_v13 = vpop.f32.mrf.mxu0 }
 0x3bd   :  { %v629_v14 = vadd.f32 %v1131_v13, %v833_v12 }
 0x3be   :  { %v623_v15 = vpop.f32.mrf.mxu0 }
 0x3bf   :  { %v624_v16 = vadd.f32 %v833_v12, %v623_v15 }
 0x3c1   :  { %1200 = vmatmul.mubr.f32.vlgmr.msra.gmra.mxu0 %v624_v16 }
 0x481   :  { %v800_v33 = vpop.f32.mrf.mxu0 }
 0x482   :  { %v801_v20 = vadd.f32 %v800_v33, %v730_v17 }
 0x483   :  { %v1201_v0 = vpop.f32.mrf.mxu0 }
 0x484   :  { %v808_v21 = vadd.f32 %v834_v19, %v801_v20 }
 0x486   :  { %v809_v22 = vadd.f32 %v808_v21, %v629_v14 }
 0x488   :  { %810 = vst [vmem:[#allocation18] sm:$0xff] %v809_v22 }
 0x489   :  { %1415 = shalt.err (!%p1412_p7)
}
 0x48a   :  { %820 = dma.vmem_to_hbm [thread:$0]  %s818_s19, 128, %s1662_s10, [#allocation5]  }
 0x48b   :  { %1434 = dma.done.wait [#allocation5], 128  }
 0x48c   :  { %1435 = vsyncadd [#allocation5], 4294967168 }
 0x48d   :  { %824 = vsyncpa [#allocation4], 1 }
 0x48e   :  { %825 = vsyncpa [#allocation7], 1 }
 0x48f   :  { %826 = vsyncpa [#allocation10], 1 }
 0x490   :  { %827 = vsyncpa [#allocation13], 1 }
 0x491   :  { %828 = vsyncpa [#allocation16], 1 }
 0x492   :  { %829 = vsyncpa [#allocation5], 1 }

// kernel: tpu_custom_call.1
= control target key start
LH: loop header
LB: loop body
LE: loop exit
PB: predicated region body
PF: predicated region fallthrough
CT: control target
= control target key end

     0   :  { %15 = vsyncpa [#allocation4], 0  ;;  %s1652_s0 = inlined_call_operand.hbm [shape: f32[8,128], index: 0, kind: input, shape index: {}]   ;;  %s1653_s1 = inlined_call_operand.hbm [shape: f32[8,128], index: 1, kind: input, shape index: {}]   ;;  %s1654_s2 = inlined_call_operand.hbm [shape: f32[128,128], index: 2, kind: input, shape index: {}]   ;;  %s1655_s3 = inlined_call_operand.hbm [shape: f32[128,128], index: 3, kind: input, shape index: {}]   ;;  %s1656_s4 = inlined_call_operand.hbm [shape: f32[128,128], index: 4, kind: input, shape index: {}]   ;;  %s1657_s5 = inlined_call_operand.hbm [shape: f32[128,128], index: 5, kind: input, shape index: {}]   ;;  %s1658_s6 = inlined_call_operand.hbm [shape: f32[128,128], index: 6, kind: input, shape index: {}]   ;;  %s1659_s7 = inlined_call_operand.hbm [shape: f32[128,128], index: 7, kind: input, shape index: {}]   ;;  %s1660_s8 = inlined_call_operand.hbm [shape: f32[128,128], index: 8, kind: input, shape index: {}]   ;;  %s1661_s9 = inlined_call_operand.vmem [shape: f32[8,128], index: 9, kind: input, shape index: {}]   ;;  %s1662_s10 = inlined_call_operand.hbm [shape: f32[8,128], index: 10, kind: output, shape index: {}]  }
   0x1   :  { %16 = vsyncpa [#allocation7], 0 }
   0x2   :  { %17 = vsyncpa [#allocation10], 0 }
   0x3   :  { %18 = vsyncpa [#allocation13], 0 }
   0x4   :  { %19 = vsyncpa [#allocation16], 0 }
   0x5   :  { %20 = vsyncpa [#allocation5], 0  ;;  %s1436_s13 = smov [#allocation6]  }
   0x6   :  { %s37_s14 = sshll.u32 %s1436_s13, 4  ;;  %s38_s14 = int_to_ptr.vmem [resolvable:$true] %s37_s14 }
   0x7   :  { %s1232_s15 = scalar_lea.vmem %s38_s14, 128  ;;  %p1237_p1 = scmp.lt.s32.totalorder %s38_s14, %s38_s14 }
   0x8   :  { %p1233_p0 = scmp.ne.s32.totalorder %s38_s14, %s1232_s15  ;;  %p1238_p2 = scmp.lt.s32.totalorder %s1232_s15, %s1232_s15 }
   0xa   :  { %p1239_p3 = por %p1238_p2, %p1237_p1 }
   0xc   :  { %p1240_p4 = pnand %p1239_p3, %p1233_p0 }
   0xe   :  { %1243 = shalt.err (!%p1240_p4)
}
   0xf   :  { %40 = dma.hbm_to_vmem [thread:$0]  %s1653_s1, 128, %s38_s14, [#allocation7]  }
  0x10   :  { %s1437_s18 = smov [#allocation9]   ;;  %s1438_s20 = smov [#allocation12]  }
  0x11   :  { %s58_s19 = sshll.u32 %s1437_s18, 4  ;;  %s82_s21 = sshll.u32 %s1438_s20, 4  ;;  %s59_s19 = int_to_ptr.vmem [resolvable:$true] %s58_s19  ;;  %s83_s21 = int_to_ptr.vmem [resolvable:$true] %s82_s21 }
  0x12   :  { %s1252_s22 = scalar_lea.vmem %s59_s19, 2048  ;;  %p1257_p6 = scmp.lt.s32.totalorder %s59_s19, %s59_s19 }
  0x13   :  { %p1253_p5 = scmp.ne.s32.totalorder %s59_s19, %s1252_s22  ;;  %p1258_p7 = scmp.lt.s32.totalorder %s1252_s22, %s1252_s22 }
  0x15   :  { %p1259_p8 = por %p1258_p7, %p1257_p6 }
  0x17   :  { %p1260_p9 = pnand %p1259_p8, %p1253_p5 }
  0x19   :  { %1263 = shalt.err (!%p1260_p9)
}
  0x1a   :  { %s1439_s23 = smov 128   ;;  %s1440_s24 = smov 8  }
  0x1b   :  { %64 = dma.hbm_to_vmem [thread:$0]  %s1655_s3, 2048, %s59_s19, [#allocation10], %s1439_s23, %s1439_s23, %s1440_s24  }
  0x1c   :  { %s1272_s1 = scalar_lea.vmem %s83_s21, 2048  ;;  %p1277_p11 = scmp.lt.s32.totalorder %s83_s21, %s83_s21 }
  0x1d   :  { %p1273_p10 = scmp.ne.s32.totalorder %s83_s21, %s1272_s1  ;;  %p1278_p12 = scmp.lt.s32.totalorder %s1272_s1, %s1272_s1 }
  0x1f   :  { %p1279_p13 = por %p1278_p12, %p1277_p11 }
  0x21   :  { %p1280_p0 = pnand %p1279_p13, %p1273_p10 }
  0x23   :  { %1283 = shalt.err (!%p1280_p0)
}
  0x24   :  { %88 = dma.hbm_to_vmem [thread:$0]  %s1657_s5, 2048, %s83_s21, [#allocation13], %s1439_s23, %s1439_s23, %s1440_s24  }
  0x25   :  { %s1441_s29 = smov [#allocation15]   ;;  %s1442_s11 = smov [#allocation3]  }
  0x26   :  { %s106_s30 = sshll.u32 %s1441_s29, 4  ;;  %s27_s3 = sshll.u32 %s1442_s11, 4  ;;  %s107_s30 = int_to_ptr.vmem [resolvable:$true] %s106_s30  ;;  %s28_s3 = int_to_ptr.vmem [resolvable:$true] %s27_s3 }
  0x27   :  { %s1292_s12 = scalar_lea.vmem %s107_s30, 2048  ;;  %p1297_p2 = scmp.lt.s32.totalorder %s107_s30, %s107_s30 }
  0x28   :  { %p1293_p1 = scmp.ne.s32.totalorder %s107_s30, %s1292_s12  ;;  %p1298_p3 = scmp.lt.s32.totalorder %s1292_s12, %s1292_s12 }
  0x2a   :  { %p1299_p4 = por %p1298_p3, %p1297_p2 }
  0x2c   :  { %p1300_p5 = pnand %p1299_p4, %p1293_p1 }
  0x2e   :  { %1303 = shalt.err (!%p1300_p5)
}
  0x2f   :  { %112 = dma.hbm_to_vmem [thread:$0]  %s1659_s7, 2048, %s107_s30, [#allocation16], %s1439_s23, %s1439_s23, %s1440_s24  }
  0x30   :  { %s1312_s5 = scalar_lea.vmem %s28_s3, 128  ;;  %p1317_p7 = scmp.lt.s32.totalorder %s28_s3, %s28_s3 }
  0x31   :  { %p1313_p6 = scmp.ne.s32.totalorder %s28_s3, %s1312_s5  ;;  %p1318_p8 = scmp.lt.s32.totalorder %s1312_s5, %s1312_s5 }
  0x33   :  { %p1319_p9 = por %p1318_p8, %p1317_p7 }
  0x35   :  { %p1320_p10 = pnand %p1319_p9, %p1313_p6 }
  0x37   :  { %1323 = shalt.err (!%p1320_p10)
}
  0x38   :  { %30 = dma.hbm_to_vmem [thread:$0]  %s1652_s0, 128, %s28_s3, [#allocation4]  }
  0x39   :  { %s1443_s17 = smov [#allocation8]   ;;  %s1444_s19 = smov [#allocation11]  }
  0x3a   :  { %s46_s18 = sshll.u32 %s1443_s17, 4  ;;  %s70_s20 = sshll.u32 %s1444_s19, 4  ;;  %s47_s18 = int_to_ptr.vmem [resolvable:$true] %s46_s18  ;;  %s71_s20 = int_to_ptr.vmem [resolvable:$true] %s70_s20 }
  0x3b   :  { %s1332_s21 = scalar_lea.vmem %s47_s18, 2048  ;;  %p1337_p12 = scmp.lt.s32.totalorder %s47_s18, %s47_s18 }
  0x3c   :  { %p1333_p11 = scmp.ne.s32.totalorder %s47_s18, %s1332_s21  ;;  %p1338_p13 = scmp.lt.s32.totalorder %s1332_s21, %s1332_s21 }
  0x3e   :  { %p1339_p0 = por %p1338_p13, %p1337_p12 }
  0x40   :  { %p1340_p1 = pnand %p1339_p0, %p1333_p11 }
  0x42   :  { %1343 = shalt.err (!%p1340_p1)
}
  0x43   :  { %52 = dma.hbm_to_vmem [thread:$0]  %s1654_s2, 2048, %s47_s18, [#allocation7], %s1439_s23, %s1439_s23, %s1440_s24  }
  0x44   :  { %s1352_s0 = scalar_lea.vmem %s71_s20, 2048  ;;  %p1357_p3 = scmp.lt.s32.totalorder %s71_s20, %s71_s20 }
  0x45   :  { %p1353_p2 = scmp.ne.s32.totalorder %s71_s20, %s1352_s0  ;;  %p1358_p4 = scmp.lt.s32.totalorder %s1352_s0, %s1352_s0 }
  0x47   :  { %p1359_p5 = por %p1358_p4, %p1357_p3 }
  0x49   :  { %p1360_p6 = pnand %p1359_p5, %p1353_p2 }
  0x4b   :  { %1363 = shalt.err (!%p1360_p6)
}
  0x4c   :  { %76 = dma.hbm_to_vmem [thread:$0]  %s1656_s4, 2048, %s71_s20, [#allocation10], %s1439_s23, %s1439_s23, %s1440_s24  }
  0x4d   :  { %s1445_s1 = smov [#allocation14]   ;;  %s1446_s28 = smov [#allocation17]  }
  0x4e   :  { %s94_s27 = sshll.u32 %s1445_s1, 4  ;;  %s118_s2 = sshll.u32 %s1446_s28, 4  ;;  %s95_s27 = int_to_ptr.vmem [resolvable:$true] %s94_s27  ;;  %s119_s2 = int_to_ptr.vmem [resolvable:$true] %s118_s2 }
  0x4f   :  { %s1372_s29 = scalar_lea.vmem %s95_s27, 2048  ;;  %p1377_p8 = scmp.lt.s32.totalorder %s95_s27, %s95_s27 }
  0x50   :  { %p1373_p7 = scmp.ne.s32.totalorder %s95_s27, %s1372_s29  ;;  %p1378_p9 = scmp.lt.s32.totalorder %s1372_s29, %s1372_s29 }
  0x52   :  { %p1379_p10 = por %p1378_p9, %p1377_p8 }
  0x54   :  { %p1380_p11 = pnand %p1379_p10, %p1373_p7 }
  0x56   :  { %1383 = shalt.err (!%p1380_p11)
}
  0x57   :  { %100 = dma.hbm_to_vmem [thread:$0]  %s1658_s6, 2048, %s95_s27, [#allocation13], %s1439_s23, %s1439_s23, %s1440_s24  }
  0x58   :  { %s1392_s4 = scalar_lea.vmem %s119_s2, 2048  ;;  %p1397_p13 = scmp.lt.s32.totalorder %s119_s2, %s119_s2 }
  0x59   :  { %p1393_p12 = scmp.ne.s32.totalorder %s119_s2, %s1392_s4  ;;  %p1398_p0 = scmp.lt.s32.totalorder %s1392_s4, %s1392_s4 }
  0x5b   :  { %p1399_p1 = por %p1398_p0, %p1397_p13 }
  0x5d   :  { %p1400_p2 = pnand %p1399_p1, %p1393_p12 }
  0x5f   :  { %1403 = shalt.err (!%p1400_p2)
}
  0x60   :  { %124 = dma.hbm_to_vmem [thread:$0]  %s1660_s8, 2048, %s119_s2, [#allocation16], %s1439_s23, %s1439_s23, %s1440_s24  }
  0x61   :  { %1424 = dma.done.wait [#allocation4], 128  }
  0x62   :  { %1425 = vsyncadd [#allocation4], 4294967168 }
  0x63   :  { %1426 = dma.done.wait [#allocation7], 2176  }
  0x64   :  { %1427 = vsyncadd [#allocation7], 4294965120 }
  0x65   :  { %1428 = dma.done.wait [#allocation10], 4096  }
  0x66   :  { %1429 = vsyncadd [#allocation10], 4294963200 }
  0x67   :  { %1430 = dma.done.wait [#allocation13], 4096  }
  0x68   :  { %1431 = vsyncadd [#allocation13], 4294963200 }
  0x69   :  { %1432 = dma.done.wait [#allocation16], 4096  }
  0x6a   :  { %1433 = vsyncadd [#allocation16], 4294963200  ;;  %v1447_v0 = vmov 0.0   ;;  %vm1448_vm0 = vmmov 0   ;;  %v192_v1 = vld [vmem:[#allocation9 + $0x78] sm:$0xff]  ;;  %v191_v3 = vld [vmem:[#allocation9 + $0x70] sm:$0xff] }
  0x6b   :  { %957 = vmatprep.subr.mxu0 %v1447_v0  ;;  %992 = vmatprep.subr.mxu1 %v1447_v0  ;;  %v176_v2 = vld [vmem:[#allocation8 + $0x78] sm:$0xff]  ;;  %v175_v4 = vld [vmem:[#allocation8 + $0x70] sm:$0xff]  ;;  %v190_v5 = vld [vmem:[#allocation9 + $0x68] sm:$0xff]  ;;  %s1449_s18 = smov [#allocation18]  }
  0x6c   :  { %989 = vmatprep.mubr.msk.f32.mxu0 %vm1448_vm0, %v1447_v0  ;;  %1024 = vmatprep.mubr.msk.f32.mxu1 %vm1448_vm0, %v1447_v0  ;;  %v174_v6 = vld [vmem:[#allocation8 + $0x68] sm:$0xff]  ;;  %v189_v7 = vld [vmem:[#allocation9 + $0x60] sm:$0xff]  ;;  %v188_v9 = vld [vmem:[#allocation9 + $0x58] sm:$0xff]  ;;  %s817_s19 = sshll.u32 %s1449_s18, 4  ;;  %s818_s19 = int_to_ptr.vmem [resolvable:$true] %s817_s19 }
  0x6d   :  { %958 = vmatpush3.msra.mxu0 %v192_v1  ;;  %993 = vmatpush3.msra.mxu1 %v176_v2  ;;  %v173_v8 = vld [vmem:[#allocation8 + $0x60] sm:$0xff]  ;;  %v172_v10 = vld [vmem:[#allocation8 + $0x58] sm:$0xff]  ;;  %v187_v11 = vld [vmem:[#allocation9 + $0x50] sm:$0xff]  ;;  %s1404_s20 = scalar_lea.vmem %s818_s19, 128  ;;  %p1409_p4 = scmp.lt.s32.totalorder %s818_s19, %s818_s19 }
  0x6e   :  { %959 = vmatprep.subr.mxu0 %v1447_v0  ;;  %994 = vmatprep.subr.mxu1 %v1447_v0  ;;  %v171_v12 = vld [vmem:[#allocation8 + $0x50] sm:$0xff]  ;;  %v186_v13 = vld [vmem:[#allocation9 + $0x48] sm:$0xff]  ;;  %v185_v15 = vld [vmem:[#allocation9 + $0x40] sm:$0xff]  ;;  %p1405_p3 = scmp.ne.s32.totalorder %s818_s19, %s1404_s20  ;;  %p1410_p5 = scmp.lt.s32.totalorder %s1404_s20, %s1404_s20 }
  0x6f   :  { %960 = vmatpush3.msra.mxu0 %v191_v3  ;;  %995 = vmatpush3.msra.mxu1 %v175_v4  ;;  %v170_v14 = vld [vmem:[#allocation8 + $0x48] sm:$0xff]  ;;  %v169_v16 = vld [vmem:[#allocation8 + $0x40] sm:$0xff]  ;;  %v184_v17 = vld [vmem:[#allocation9 + $0x38] sm:$0xff] }
  0x70   :  { %961 = vmatprep.subr.mxu0 %v1447_v0  ;;  %996 = vmatprep.subr.mxu1 %v1447_v0  ;;  %v168_v18 = vld [vmem:[#allocation8 + $0x38] sm:$0xff]  ;;  %v183_v19 = vld [vmem:[#allocation9 + $0x30] sm:$0xff]  ;;  %v182_v21 = vld [vmem:[#allocation9 + $0x28] sm:$0xff]  ;;  %p1411_p6 = por %p1410_p5, %p1409_p4 }
  0x71   :  { %962 = vmatpush3.msra.mxu0 %v190_v5  ;;  %997 = vmatpush3.msra.mxu1 %v174_v6  ;;  %v167_v20 = vld [vmem:[#allocation8 + $0x30] sm:$0xff]  ;;  %v166_v22 = vld [vmem:[#allocation8 + $0x28] sm:$0xff]  ;;  %v181_v23 = vld [vmem:[#allocation9 + $0x20] sm:$0xff] }
  0x72   :  { %963 = vmatprep.subr.mxu0 %v1447_v0  ;;  %998 = vmatprep.subr.mxu1 %v1447_v0  ;;  %v165_v24 = vld [vmem:[#allocation8 + $0x20] sm:$0xff]  ;;  %v180_v25 = vld [vmem:[#allocation9 + $0x18] sm:$0xff]  ;;  %v179_v27 = vld [vmem:[#allocation9 + $0x10] sm:$0xff]  ;;  %p1412_p7 = pnand %p1411_p6, %p1405_p3 }
  0x73   :  { %964 = vmatpush3.msra.mxu0 %v189_v7  ;;  %999 = vmatpush3.msra.mxu1 %v173_v8  ;;  %v164_v26 = vld [vmem:[#allocation8 + $0x18] sm:$0xff]  ;;  %v163_v28 = vld [vmem:[#allocation8 + $0x10] sm:$0xff]  ;;  %v178_v29 = vld [vmem:[#allocation9 + $0x8] sm:$0xff] }
  0x74   :  { %965 = vmatprep.subr.mxu0 %v1447_v0  ;;  %1000 = vmatprep.subr.mxu1 %v1447_v0  ;;  %v162_v30 = vld [vmem:[#allocation8 + $0x8] sm:$0xff]  ;;  %v177_v31 = vld [vmem:[#allocation9] sm:$0xff]  ;;  %v1587_v33 = vld [vmem:[#allocation6] sm:$0xff] }
  0x75   :  { %966 = vmatpush3.msra.mxu0 %v188_v9  ;;  %1001 = vmatpush3.msra.mxu1 %v172_v10  ;;  %v161_v32 = vld [vmem:[#allocation8] sm:$0xff]  ;;  %v1589_v34 = vld [vmem:[#allocation3] sm:$0xff]  ;;  %v358_v35 = vld [vmem:[#allocation11 + $0x78] sm:$0xff] }
  0x76   :  { %967 = vmatprep.subr.mxu0 %v1447_v0  ;;  %1002 = vmatprep.subr.mxu1 %v1447_v0  ;;  %v357_v36 = vld [vmem:[#allocation11 + $0x70] sm:$0xff]  ;;  %v356_v37 = vld [vmem:[#allocation11 + $0x68] sm:$0xff]  ;;  %v355_v38 = vld [vmem:[#allocation11 + $0x60] sm:$0xff] }
  0x77   :  { %968 = vmatpush3.msra.mxu0 %v187_v11  ;;  %1003 = vmatpush3.msra.mxu1 %v171_v12  ;;  %v354_v39 = vld [vmem:[#allocation11 + $0x58] sm:$0xff]  ;;  %v353_v40 = vld [vmem:[#allocation11 + $0x50] sm:$0xff]  ;;  %v352_v41 = vld [vmem:[#allocation11 + $0x48] sm:$0xff] }
  0x78   :  { %969 = vmatprep.subr.mxu0 %v1447_v0  ;;  %1004 = vmatprep.subr.mxu1 %v1447_v0  ;;  %v351_v42 = vld [vmem:[#allocation11 + $0x40] sm:$0xff]  ;;  %v350_v43 = vld [vmem:[#allocation11 + $0x38] sm:$0xff]  ;;  %v349_v44 = vld [vmem:[#allocation11 + $0x30] sm:$0xff] }
  0x79   :  { %970 = vmatpush3.msra.mxu0 %v186_v13  ;;  %1005 = vmatpush3.msra.mxu1 %v170_v14  ;;  %v348_v45 = vld [vmem:[#allocation11 + $0x28] sm:$0xff]  ;;  %v347_v46 = vld [vmem:[#allocation11 + $0x20] sm:$0xff]  ;;  %v346_v47 = vld [vmem:[#allocation11 + $0x18] sm:$0xff] }
  0x7a   :  { %971 = vmatprep.subr.mxu0 %v1447_v0  ;;  %1006 = vmatprep.subr.mxu1 %v1447_v0  ;;  %v345_v48 = vld [vmem:[#allocation11 + $0x10] sm:$0xff]  ;;  %v344_v49 = vld [vmem:[#allocation11 + $0x8] sm:$0xff]  ;;  %v343_v50 = vld [vmem:[#allocation11] sm:$0xff] }
  0x7b   :  { %972 = vmatpush3.msra.mxu0 %v185_v15  ;;  %1007 = vmatpush3.msra.mxu1 %v169_v16  ;;  %v455_v51 = vld [vmem:[#allocation12 + $0x78] sm:$0xff]  ;;  %v454_v52 = vld [vmem:[#allocation12 + $0x70] sm:$0xff]  ;;  %v453_v53 = vld [vmem:[#allocation12 + $0x68] sm:$0xff] }
  0x7c   :  { %973 = vmatprep.subr.mxu0 %v1447_v0  ;;  %1008 = vmatprep.subr.mxu1 %v1447_v0  ;;  %v452_v54 = vld [vmem:[#allocation12 + $0x60] sm:$0xff]  ;;  %v451_v55 = vld [vmem:[#allocation12 + $0x58] sm:$0xff]  ;;  %v450_v56 = vld [vmem:[#allocation12 + $0x50] sm:$0xff] }
  0x7d   :  { %974 = vmatpush3.msra.mxu0 %v184_v17  ;;  %1009 = vmatpush3.msra.mxu1 %v168_v18  ;;  %v830_v58 = vld [vmem:[%s1661_s9] ss:$0 sm:$0xff]  ;;  %v449_v2 = vld [vmem:[#allocation12 + $0x48] sm:$0xff]  ;;  %v448_v3 = vld [vmem:[#allocation12 + $0x40] sm:$0xff] }
  0x7e   :  { %975 = vmatprep.subr.mxu0 %v1447_v0  ;;  %1010 = vmatprep.subr.mxu1 %v1447_v0  ;;  %v447_v4 = vld [vmem:[#allocation12 + $0x38] sm:$0xff]  ;;  %v446_v5 = vld [vmem:[#allocation12 + $0x30] sm:$0xff]  ;;  %v445_v6 = vld [vmem:[#allocation12 + $0x28] sm:$0xff] }
  0x7f   :  { %976 = vmatpush3.msra.mxu0 %v183_v19  ;;  %1011 = vmatpush3.msra.mxu1 %v167_v20  ;;  %v444_v7 = vld [vmem:[#allocation12 + $0x20] sm:$0xff]  ;;  %v443_v8 = vld [vmem:[#allocation12 + $0x18] sm:$0xff]  ;;  %v442_v9 = vld [vmem:[#allocation12 + $0x10] sm:$0xff] }
  0x80   :  { %977 = vmatprep.subr.mxu0 %v1447_v0  ;;  %1012 = vmatprep.subr.mxu1 %v1447_v0  ;;  %v441_v10 = vld [vmem:[#allocation12 + $0x8] sm:$0xff]  ;;  %v440_v11 = vld [vmem:[#allocation12] sm:$0xff]  ;;  %v552_v12 = vld [vmem:[#allocation14 + $0x78] sm:$0xff] }
  0x81   :  { %978 = vmatpush3.msra.mxu0 %v182_v21  ;;  %1013 = vmatpush3.msra.mxu1 %v166_v22  ;;  %v551_v13 = vld [vmem:[#allocation14 + $0x70] sm:$0xff]  ;;  %v550_v14 = vld [vmem:[#allocation14 + $0x68] sm:$0xff]  ;;  %v549_v15 = vld [vmem:[#allocation14 + $0x60] sm:$0xff] }
  0x82   :  { %979 = vmatprep.subr.mxu0 %v1447_v0  ;;  %1014 = vmatprep.subr.mxu1 %v1447_v0  ;;  %v548_v16 = vld [vmem:[#allocation14 + $0x58] sm:$0xff]  ;;  %v547_v17 = vld [vmem:[#allocation14 + $0x50] sm:$0xff] }
  0x83   :  { %980 = vmatpush3.msra.mxu0 %v181_v23  ;;  %1015 = vmatpush3.msra.mxu1 %v165_v24  ;;  %v831_v18 = vld [vmem:[%s1661_s9 + $0x1] ss:$0 sm:$0xff] }
  0x84   :  { %981 = vmatprep.subr.mxu0 %v1447_v0  ;;  %1016 = vmatprep.subr.mxu1 %v1447_v0 }
  0x85   :  { %982 = vmatpush3.msra.mxu0 %v180_v25  ;;  %1017 = vmatpush3.msra.mxu1 %v164_v26  ;;  %v546_v25 = vld [vmem:[#allocation14 + $0x48] sm:$0xff]  ;;  %v545_v26 = vld [vmem:[#allocation14 + $0x40] sm:$0xff] }
  0x86   :  { %983 = vmatprep.subr.mxu0 %v1447_v0  ;;  %1018 = vmatprep.subr.mxu1 %v1447_v0 }
  0x87   :  { %984 = vmatpush3.msra.mxu0 %v179_v27  ;;  %1019 = vmatpush3.msra.mxu1 %v163_v28  ;;  %v544_v27 = vld [vmem:[#allocation14 + $0x38] sm:$0xff]  ;;  %v543_v28 = vld [vmem:[#allocation14 + $0x30] sm:$0xff] }
  0x88   :  { %985 = vmatprep.subr.mxu0 %v1447_v0  ;;  %1020 = vmatprep.subr.mxu1 %v1447_v0 }
  0x89   :  { %986 = vmatpush3.msra.mxu0 %v178_v29  ;;  %1021 = vmatpush3.msra.mxu1 %v162_v30  ;;  %v542_v29 = vld [vmem:[#allocation14 + $0x28] sm:$0xff]  ;;  %v541_v30 = vld [vmem:[#allocation14 + $0x20] sm:$0xff] }
  0x8a   :  { %987 = vmatprep.subr.mxu0 %v1447_v0  ;;  %1022 = vmatprep.subr.mxu1 %v1447_v0 }
  0x8b   :  { %988 = vmatpush3.msra.mxu0 %v177_v31  ;;  %1023 = vmatpush3.msra.mxu1 %v161_v32  ;;  %v540_v31 = vld [vmem:[#allocation14 + $0x18] sm:$0xff]  ;;  %v539_v32 = vld [vmem:[#allocation14 + $0x10] sm:$0xff] }
  0x8c   :  { %990 = vmatmul.mubr.f32.vlgmr.msra.gmra.mxu0 %v1587_v33  ;;  %1025 = vmatmul.mubr.f32.vlgmr.msra.gmra.mxu1 %v1589_v34 }
  0x8d   :  { %1027 = vmatprep.subr.mxu0 %v358_v35  ;;  %1062 = vmatprep.subr.mxu1 %v455_v51 }
  0x8e   :  { %1028 = vmatpush3.msra.mxu0 %v358_v35  ;;  %1063 = vmatpush3.msra.mxu1 %v455_v51  ;;  %v537_v35 = vld [vmem:[#allocation14] sm:$0xff] }
  0x8f   :  { %1029 = vmatprep.subr.mxu0 %v357_v36  ;;  %1064 = vmatprep.subr.mxu1 %v454_v52 }
  0x90   :  { %1030 = vmatpush3.msra.mxu0 %v357_v36  ;;  %1065 = vmatpush3.msra.mxu1 %v454_v52  ;;  %v663_v36 = vld [vmem:[#allocation17 + $0x78] sm:$0xff] }
  0x91   :  { %1031 = vmatprep.subr.mxu0 %v356_v37  ;;  %1066 = vmatprep.subr.mxu1 %v453_v53 }
  0x92   :  { %1032 = vmatpush3.msra.mxu0 %v356_v37  ;;  %1067 = vmatpush3.msra.mxu1 %v453_v53  ;;  %v662_v37 = vld [vmem:[#allocation17 + $0x70] sm:$0xff] }
  0x93   :  { %1033 = vmatprep.subr.mxu0 %v355_v38  ;;  %1068 = vmatprep.subr.mxu1 %v452_v54 }
  0x94   :  { %1034 = vmatpush3.msra.mxu0 %v355_v38  ;;  %1069 = vmatpush3.msra.mxu1 %v452_v54  ;;  %v661_v38 = vld [vmem:[#allocation17 + $0x68] sm:$0xff] }
  0x95   :  { %1035 = vmatprep.subr.mxu0 %v354_v39  ;;  %1070 = vmatprep.subr.mxu1 %v451_v55 }
  0x96   :  { %1036 = vmatpush3.msra.mxu0 %v354_v39  ;;  %1071 = vmatpush3.msra.mxu1 %v451_v55  ;;  %v660_v39 = vld [vmem:[#allocation17 + $0x60] sm:$0xff] }
  0x97   :  { %1037 = vmatprep.subr.mxu0 %v353_v40  ;;  %1072 = vmatprep.subr.mxu1 %v450_v56 }
  0x98   :  { %1038 = vmatpush3.msra.mxu0 %v353_v40  ;;  %1073 = vmatpush3.msra.mxu1 %v450_v56  ;;  %v659_v40 = vld [vmem:[#allocation17 + $0x58] sm:$0xff] }
  0x99   :  { %1039 = vmatprep.subr.mxu0 %v352_v41  ;;  %1074 = vmatprep.subr.mxu1 %v449_v2  ;;  %v647_v56 = vld [vmem:[#allocation15 + $0x78] sm:$0xff] }
  0x9a   :  { %1040 = vmatpush3.msra.mxu0 %v352_v41  ;;  %1075 = vmatpush3.msra.mxu1 %v449_v2  ;;  %v658_v41 = vld [vmem:[#allocation17 + $0x50] sm:$0xff]  ;;  %v639_v2 = vld [vmem:[#allocation15 + $0x38] sm:$0xff] }
  0x9b   :  { %1041 = vmatprep.subr.mxu0 %v351_v42  ;;  %1076 = vmatprep.subr.mxu1 %v448_v3 }
  0x9c   :  { %1042 = vmatpush3.msra.mxu0 %v351_v42  ;;  %1077 = vmatpush3.msra.mxu1 %v448_v3  ;;  %v657_v42 = vld [vmem:[#allocation17 + $0x48] sm:$0xff]  ;;  %v638_v3 = vld [vmem:[#allocation15 + $0x30] sm:$0xff] }
  0x9d   :  { %1043 = vmatprep.subr.mxu0 %v350_v43  ;;  %1078 = vmatprep.subr.mxu1 %v447_v4 }
  0x9e   :  { %1044 = vmatpush3.msra.mxu0 %v350_v43  ;;  %1079 = vmatpush3.msra.mxu1 %v447_v4  ;;  %v656_v43 = vld [vmem:[#allocation17 + $0x40] sm:$0xff]  ;;  %v637_v4 = vld [vmem:[#allocation15 + $0x28] sm:$0xff] }
  0x9f   :  { %1045 = vmatprep.subr.mxu0 %v349_v44  ;;  %1080 = vmatprep.subr.mxu1 %v446_v5 }
  0xa0   :  { %1046 = vmatpush3.msra.mxu0 %v349_v44  ;;  %1081 = vmatpush3.msra.mxu1 %v446_v5  ;;  %v655_v44 = vld [vmem:[#allocation17 + $0x38] sm:$0xff]  ;;  %v636_v5 = vld [vmem:[#allocation15 + $0x20] sm:$0xff] }
  0xa1   :  { %1047 = vmatprep.subr.mxu0 %v348_v45  ;;  %1082 = vmatprep.subr.mxu1 %v445_v6 }
  0xa2   :  { %1048 = vmatpush3.msra.mxu0 %v348_v45  ;;  %1083 = vmatpush3.msra.mxu1 %v445_v6  ;;  %v654_v45 = vld [vmem:[#allocation17 + $0x30] sm:$0xff]  ;;  %v635_v6 = vld [vmem:[#allocation15 + $0x18] sm:$0xff] }
  0xa3   :  { %1049 = vmatprep.subr.mxu0 %v347_v46  ;;  %1084 = vmatprep.subr.mxu1 %v444_v7 }
  0xa4   :  { %1050 = vmatpush3.msra.mxu0 %v347_v46  ;;  %1085 = vmatpush3.msra.mxu1 %v444_v7  ;;  %v653_v46 = vld [vmem:[#allocation17 + $0x28] sm:$0xff] }
  0xa5   :  { %1051 = vmatprep.subr.mxu0 %v346_v47  ;;  %1086 = vmatprep.subr.mxu1 %v443_v8  ;;  %v649_v7 = vld [vmem:[#allocation17 + $0x8] sm:$0xff] }
  0xa6   :  { %1052 = vmatpush3.msra.mxu0 %v346_v47  ;;  %1087 = vmatpush3.msra.mxu1 %v443_v8  ;;  %v652_v47 = vld [vmem:[#allocation17 + $0x20] sm:$0xff]  ;;  %v634_v8 = vld [vmem:[#allocation15 + $0x10] sm:$0xff] }
  0xa7   :  { %1053 = vmatprep.subr.mxu0 %v345_v48  ;;  %1088 = vmatprep.subr.mxu1 %v442_v9 }
  0xa8   :  { %1054 = vmatpush3.msra.mxu0 %v345_v48  ;;  %1089 = vmatpush3.msra.mxu1 %v442_v9  ;;  %v651_v48 = vld [vmem:[#allocation17 + $0x18] sm:$0xff]  ;;  %v648_v9 = vld [vmem:[#allocation17] sm:$0xff] }
  0xa9   :  { %1055 = vmatprep.subr.mxu0 %v344_v49  ;;  %1090 = vmatprep.subr.mxu1 %v441_v10 }
  0xaa   :  { %1056 = vmatpush3.msra.mxu0 %v344_v49  ;;  %1091 = vmatpush3.msra.mxu1 %v441_v10  ;;  %v650_v49 = vld [vmem:[#allocation17 + $0x10] sm:$0xff]  ;;  %v633_v10 = vld [vmem:[#allocation15 + $0x8] sm:$0xff] }
  0xab   :  { %1057 = vmatprep.subr.mxu0 %v343_v50  ;;  %1092 = vmatprep.subr.mxu1 %v440_v11 }
  0xac   :  { %1058 = vmatpush3.msra.mxu0 %v343_v50  ;;  %1093 = vmatpush3.msra.mxu1 %v440_v11  ;;  %v832_v50 = vld [vmem:[%s1661_s9 + $0x2] ss:$0 sm:$0xff]  ;;  %v632_v11 = vld [vmem:[#allocation15] sm:$0xff] }
  0xad   :  { %1132 = vmatprep.subr.mxu1 %v1447_v0  ;;  %1097 = vmatprep.subr.mxu0 %v552_v12 }
 0x14c   :  { %v259_v57 = vpop.f32.mrf.mxu0  ;;  %v329_v59 = vpop.f32.mrf.mxu1 }
 0x14d   :  { %v330_v60 = vadd.f32 %v329_v59, %v259_v57  ;;  %v645_v59 = vld [vmem:[#allocation15 + $0x68] sm:$0xff] }
 0x14e   :  { %v991_v61 = vpop.f32.mrf.mxu0  ;;  %v1026_v62 = vpop.f32.mrf.mxu1 }
 0x14f   :  { %v337_v63 = vadd.f32 %v830_v58, %v330_v60  ;;  %v646_v58 = vld [vmem:[#allocation15 + $0x70] sm:$0xff]  ;;  %v644_v60 = vld [vmem:[#allocation15 + $0x60] sm:$0xff]  ;;  %v643_v61 = vld [vmem:[#allocation15 + $0x58] sm:$0xff] }
 0x150   :  { %v642_v62 = vld [vmem:[#allocation15 + $0x50] sm:$0xff] }
 0x151   :  { %v338_v1 = vadd.f32 %v337_v63, %v1589_v34  ;;  %v641_v63 = vld [vmem:[#allocation15 + $0x48] sm:$0xff] }
 0x153   :  { %1059 = vmatprep.mubr.f32.mxu0 %v338_v1  ;;  %v640_v1 = vld [vmem:[#allocation15 + $0x40] sm:$0xff] }
 0x154   :  { %1060 = vmatmul.mubr.f32.vlgmr.msra.gmra.mxu0 %v1589_v34  ;;  %v538_v34 = vld [vmem:[#allocation14 + $0x8] sm:$0xff] }
 0x155   :  { %1098 = vmatpush3.msra.mxu0 %v552_v12  ;;  %v833_v12 = vld [vmem:[%s1661_s9 + $0x3] ss:$0 sm:$0xff] }
 0x156   :  { %1099 = vmatprep.subr.mxu0 %v551_v13 }
 0x157   :  { %1100 = vmatpush3.msra.mxu0 %v551_v13 }
 0x158   :  { %1101 = vmatprep.subr.mxu0 %v550_v14 }
 0x159   :  { %1102 = vmatpush3.msra.mxu0 %v550_v14 }
 0x15a   :  { %1103 = vmatprep.subr.mxu0 %v549_v15 }
 0x15b   :  { %1104 = vmatpush3.msra.mxu0 %v549_v15 }
 0x15c   :  { %1105 = vmatprep.subr.mxu0 %v548_v16 }
 0x15d   :  { %1106 = vmatpush3.msra.mxu0 %v548_v16 }
 0x15e   :  { %1107 = vmatprep.subr.mxu0 %v547_v17 }
 0x15f   :  { %1108 = vmatpush3.msra.mxu0 %v547_v17 }
 0x160   :  { %1109 = vmatprep.subr.mxu0 %v546_v25 }
 0x161   :  { %1110 = vmatpush3.msra.mxu0 %v546_v25 }
 0x162   :  { %1111 = vmatprep.subr.mxu0 %v545_v26 }
 0x163   :  { %1112 = vmatpush3.msra.mxu0 %v545_v26 }
 0x164   :  { %1113 = vmatprep.subr.mxu0 %v544_v27 }
 0x165   :  { %1114 = vmatpush3.msra.mxu0 %v544_v27 }
 0x166   :  { %1115 = vmatprep.subr.mxu0 %v543_v28 }
 0x167   :  { %1116 = vmatpush3.msra.mxu0 %v543_v28 }
 0x168   :  { %1117 = vmatprep.subr.mxu0 %v542_v29 }
 0x169   :  { %1118 = vmatpush3.msra.mxu0 %v542_v29 }
 0x16a   :  { %1119 = vmatprep.subr.mxu0 %v541_v30 }
 0x16b   :  { %1120 = vmatpush3.msra.mxu0 %v541_v30 }
 0x16c   :  { %1121 = vmatprep.subr.mxu0 %v540_v31 }
 0x16d   :  { %1122 = vmatpush3.msra.mxu0 %v540_v31 }
 0x16e   :  { %1123 = vmatprep.subr.mxu0 %v539_v32 }
 0x16f   :  { %1124 = vmatpush3.msra.mxu0 %v539_v32 }
 0x170   :  { %1125 = vmatprep.subr.mxu0 %v538_v34 }
 0x171   :  { %1126 = vmatpush3.msra.mxu0 %v538_v34 }
 0x172   :  { %1127 = vmatprep.subr.mxu0 %v537_v35 }
 0x173   :  { %1128 = vmatpush3.msra.mxu0 %v537_v35 }
 0x174   :  { %1167 = vmatprep.subr.mxu0 %v1447_v0 }
 0x214   :  { %v1061_v19 = vpop.f32.mrf.mxu0 }
 0x215   :  { %v435_v20 = vadd.f32 %v1061_v19, %v831_v18  ;;  %v834_v19 = vld [vmem:[%s1661_s9 + $0x4] ss:$0 sm:$0xff] }
 0x216   :  { %v429_v21 = vpop.f32.mrf.mxu0 }
 0x217   :  { %v430_v22 = vadd.f32 %v831_v18, %v429_v21 }
 0x219   :  { %1216 = vtanh.f32 %v430_v22 }
 0x21a   :  { %1218 = vtanh.f32 %v435_v20 }
 0x226   :  { %v1217_v23 = vpop.eup %1216 }
 0x227   :  { %v1219_v24 = vpop.eup %1218  ;;  %1094 = vmatprep.mubr.f32.mxu1 %v1217_v23 }
 0x228   :  { %1095 = vmatmul.mubr.f32.vlgmr.msra.gmra.mxu1 %v1219_v24 }
 0x229   :  { %1164 = vmatprep.mubr.msk.f32.mxu1 %vm1448_vm0, %v1447_v0  ;;  %1133 = vmatpush3.msra.mxu1 %v663_v36 }
 0x22a   :  { %1134 = vmatprep.subr.mxu1 %v1447_v0 }
 0x22b   :  { %1135 = vmatpush3.msra.mxu1 %v662_v37 }
 0x22c   :  { %1136 = vmatprep.subr.mxu1 %v1447_v0 }
 0x22d   :  { %1137 = vmatpush3.msra.mxu1 %v661_v38 }
 0x22e   :  { %1138 = vmatprep.subr.mxu1 %v1447_v0 }
 0x22f   :  { %1139 = vmatpush3.msra.mxu1 %v660_v39 }
 0x230   :  { %1140 = vmatprep.subr.mxu1 %v1447_v0 }
 0x231   :  { %1141 = vmatpush3.msra.mxu1 %v659_v40 }
 0x232   :  { %1142 = vmatprep.subr.mxu1 %v1447_v0 }
 0x233   :  { %1143 = vmatpush3.msra.mxu1 %v658_v41 }
 0x234   :  { %1144 = vmatprep.subr.mxu1 %v1447_v0 }
 0x235   :  { %1145 = vmatpush3.msra.mxu1 %v657_v42 }
 0x236   :  { %1146 = vmatprep.subr.mxu1 %v1447_v0 }
 0x237   :  { %1147 = vmatpush3.msra.mxu1 %v656_v43 }
 0x238   :  { %1148 = vmatprep.subr.mxu1 %v1447_v0 }
 0x239   :  { %1149 = vmatpush3.msra.mxu1 %v655_v44 }
 0x23a   :  { %1150 = vmatprep.subr.mxu1 %v1447_v0 }
 0x23b   :  { %1151 = vmatpush3.msra.mxu1 %v654_v45 }
 0x23c   :  { %1152 = vmatprep.subr.mxu1 %v1447_v0 }
 0x23d   :  { %1153 = vmatpush3.msra.mxu1 %v653_v46 }
 0x23e   :  { %1154 = vmatprep.subr.mxu1 %v1447_v0 }
 0x23f   :  { %1155 = vmatpush3.msra.mxu1 %v652_v47 }
 0x240   :  { %1156 = vmatprep.subr.mxu1 %v1447_v0 }
 0x241   :  { %1157 = vmatpush3.msra.mxu1 %v651_v48 }
 0x242   :  { %1158 = vmatprep.subr.mxu1 %v1447_v0 }
 0x243   :  { %1159 = vmatpush3.msra.mxu1 %v650_v49 }
 0x244   :  { %1160 = vmatprep.subr.mxu1 %v1447_v0 }
 0x245   :  { %1161 = vmatpush3.msra.mxu1 %v649_v7 }
 0x246   :  { %1162 = vmatprep.subr.mxu1 %v1447_v0 }
 0x247   :  { %1163 = vmatpush3.msra.mxu1 %v648_v9 }
 0x248   :  { %1165 = vmatmul.mubr.f32.vlgmr.msra.gmra.mxu1 %v1587_v33 }
 0x2e8   :  { %v1096_v51 = vpop.f32.mrf.mxu1 }
 0x2e9   :  { %v532_v52 = vadd.f32 %v1096_v51, %v832_v50 }
 0x2ea   :  { %v526_v53 = vpop.f32.mrf.mxu1 }
 0x2eb   :  { %v527_v54 = vadd.f32 %v832_v50, %v526_v53 }
 0x2ed   :  { %1220 = vtanh.f32 %v527_v54 }
 0x2ee   :  { %1222 = vtanh.f32 %v532_v52 }
 0x2fa   :  { %v1221_v55 = vpop.eup %1220 }
 0x2fb   :  { %v1223_v57 = vpop.eup %1222  ;;  %1129 = vmatprep.mubr.f32.mxu0 %v1221_v55 }
 0x2fc   :  { %1130 = vmatmul.mubr.f32.vlgmr.msra.gmra.mxu0 %v1223_v57 }
 0x2fd   :  { %1168 = vmatpush3.msra.mxu0 %v647_v56  ;;  %1199 = vmatprep.mubr.msk.f32.mxu0 %vm1448_vm0, %v1447_v0 }
 0x2fe   :  { %1169 = vmatprep.subr.mxu0 %v1447_v0 }
 0x2ff   :  { %1170 = vmatpush3.msra.mxu0 %v646_v58 }
 0x300   :  { %1171 = vmatprep.subr.mxu0 %v1447_v0 }
 0x301   :  { %1172 = vmatpush3.msra.mxu0 %v645_v59 }
 0x302   :  { %1173 = vmatprep.subr.mxu0 %v1447_v0 }
 0x303   :  { %1174 = vmatpush3.msra.mxu0 %v644_v60 }
 0x304   :  { %1175 = vmatprep.subr.mxu0 %v1447_v0 }
 0x305   :  { %1176 = vmatpush3.msra.mxu0 %v643_v61 }
 0x306   :  { %1177 = vmatprep.subr.mxu0 %v1447_v0 }
 0x307   :  { %1178 = vmatpush3.msra.mxu0 %v642_v62 }
 0x308   :  { %1179 = vmatprep.subr.mxu0 %v1447_v0  ;;  %v730_v17 = vpop.f32.mrf.mxu1 }
 0x309   :  { %1180 = vmatpush3.msra.mxu0 %v641_v63 }
 0x30a   :  { %1181 = vmatprep.subr.mxu0 %v1447_v0  ;;  %v1166_v18 = vpop.f32.mrf.mxu1 }
 0x30b   :  { %1182 = vmatpush3.msra.mxu0 %v640_v1 }
 0x30c   :  { %1183 = vmatprep.subr.mxu0 %v1447_v0 }
 0x30d   :  { %1184 = vmatpush3.msra.mxu0 %v639_v2 }
 0x30e   :  { %1185 = vmatprep.subr.mxu0 %v1447_v0 }
 0x30f   :  { %1186 = vmatpush3.msra.mxu0 %v638_v3 }
 0x310   :  { %1187 = vmatprep.subr.mxu0 %v1447_v0 }
 0x311   :  { %1188 = vmatpush3.msra.mxu0 %v637_v4 }
 0x312   :  { %1189 = vmatprep.subr.mxu0 %v1447_v0 }
 0x313   :  { %1190 = vmatpush3.msra.mxu0 %v636_v5 }
 0x314   :  { %1191 = vmatprep.subr.mxu0 %v1447_v0 }
 0x315   :  { %1192 = vmatpush3.msra.mxu0 %v635_v6 }
 0x316   :  { %1193 = vmatprep.subr.mxu0 %v1447_v0 }
 0x317   :  { %1194 = vmatpush3.msra.mxu0 %v634_v8 }
 0x318   :  { %1195 = vmatprep.subr.mxu0 %v1447_v0 }
 0x319   :  { %1196 = vmatpush3.msra.mxu0 %v633_v10 }
 0x31a   :  { %1197 = vmatprep.subr.mxu0 %v1447_v0 }
 0x31b   :  { %1198 = vmatpush3.msra.mxu0 %v632_v11 }
 0x3bc   :  { %v1131_v13 = vpop.f32.mrf.mxu0 }
 0x3bd   :  { %v629_v14 = vadd.f32 %v1131_v13, %v833_v12 }
 0x3be   :  { %v623_v15 = vpop.f32.mrf.mxu0 }
 0x3bf   :  { %v624_v16 = vadd.f32 %v833_v12, %v623_v15 }
 0x3c1   :  { %1200 = vmatmul.mubr.f32.vlgmr.msra.gmra.mxu0 %v624_v16 }
 0x481   :  { %v800_v33 = vpop.f32.mrf.mxu0 }
 0x482   :  { %v801_v20 = vadd.f32 %v800_v33, %v730_v17 }
 0x483   :  { %v1201_v0 = vpop.f32.mrf.mxu0 }
 0x484   :  { %v808_v21 = vadd.f32 %v834_v19, %v801_v20 }
 0x486   :  { %v809_v22 = vadd.f32 %v808_v21, %v629_v14 }
 0x488   :  { %810 = vst [vmem:[#allocation18] sm:$0xff] %v809_v22 }
 0x489   :  { %1415 = shalt.err (!%p1412_p7)
}
 0x48a   :  { %820 = dma.vmem_to_hbm [thread:$0]  %s818_s19, 128, %s1662_s10, [#allocation5]  }
 0x48b   :  { %1434 = dma.done.wait [#allocation5], 128  }
 0x48c   :  { %1435 = vsyncadd [#allocation5], 4294967168 }
 0x48d   :  { %824 = vsyncpa [#allocation4], 1 }
 0x48e   :  { %825 = vsyncpa [#allocation7], 1 }
 0x48f   :  { %826 = vsyncpa [#allocation10], 1 }
 0x490   :  { %827 = vsyncpa [#allocation13], 1 }
 0x491   :  { %828 = vsyncpa [#allocation16], 1 }
 0x492   :  { %829 = vsyncpa [#allocation5], 1 }

</bundles_post_ra>
